<compile_context>
chip_gen: v7x
topology: tpu7x:2x2x1
jax: 0.10.0
libtpu: 0.0.40
codegen_flags: <defaults>
</compile_context>

<pallas_src>
import functools

import jax
import jax.numpy as jnp
import numpy as np
from jax import lax
from jax.experimental import pallas as pl
from jax.experimental.pallas import tpu as pltpu


def _round_up(x, m):
    return ((x + m - 1) // m) * m


# VMEM capacity: 64 MiB/TC on v7x, 128 MiB on v5e/v6e. Conservative fallback.
try:
    _VMEM_CAP = int(pltpu.get_tpu_info().vmem_capacity_bytes)
    if _VMEM_CAP <= 0:
        _VMEM_CAP = 64 * 2 ** 20
except Exception:
    _VMEM_CAP = 64 * 2 ** 20


def _sigmoid(x):
    # One EUP transcendental (tanh) instead of exp + reciprocal.
    return 0.5 * jnp.tanh(0.5 * x) + 0.5


# ----------------------------------------------------------------------------
# Multi-input projection kernel:  out = sum_i x_i @ w_i + b  (f32 accumulation).
# Used for the hoisted LSTM input projections (consuming the two direction
# streams of the previous layer WITHOUT concatenating them) and for the final
# Linear layer. Output lane dim padded to a multiple of 128 (lane-dense stores).
# ----------------------------------------------------------------------------
def _make_proj_kernel(n_in):
    def kernel(*refs):
        x_refs = refs[:n_in]
        w_refs = refs[n_in:2 * n_in]
        b_ref = refs[2 * n_in]
        o_ref = refs[2 * n_in + 1]
        acc = jnp.dot(x_refs[0][...], w_refs[0][...],
                      preferred_element_type=jnp.float32)
        for xr, wr in zip(x_refs[1:], w_refs[1:]):
            acc = acc + jnp.dot(xr[...], wr[...],
                                preferred_element_type=jnp.float32)
        o_ref[...] = (acc + b_ref[...]).astype(o_ref.dtype)
    return kernel


def _projection(xs, ws, b, *, compute_dtype, out_dtype,
                row_tile=512, col_tile=512):
    """xs[i]: (M, K_i), ws[i]: (K_i, N), b: (N,) -> (M, Np), Np = round_up(N,128).

    Padded output columns are exactly zero (weights/bias zero-padded here)."""
    n_in = len(xs)
    M = xs[0].shape[0]
    N = ws[0].shape[1]
    Np = _round_up(N, 128)

    Mp = _round_up(M, 8)
    tm = min(row_tile, Mp)
    while Mp % tm:
        tm -= 8
    tn = min(col_tile, Np)
    while Np % tn:
        tn -= 128

    xs_p, ws_p = [], []
    for x, w in zip(xs, ws):
        xp = x.astype(compute_dtype)
        if Mp != M:
            xp = jnp.pad(xp, ((0, Mp - M), (0, 0)))
        wp = w.astype(compute_dtype)
        if Np != N:
            wp = jnp.pad(wp, ((0, 0), (0, Np - N)))
        xs_p.append(xp)
        ws_p.append(wp)
    bp = b.astype(jnp.float32)
    if Np != N:
        bp = jnp.pad(bp, ((0, Np - N),))
    bp = bp[None, :]

    csz = np.dtype(compute_dtype).itemsize
    osz = np.dtype(out_dtype).itemsize
    est = 2 * sum(tm * x.shape[1] * csz + x.shape[1] * tn * csz for x in xs_p) \
        + 2 * (tn * 4 + tm * tn * osz)
    vmem_limit = int(min(0.9 * _VMEM_CAP, max(2 * est + (8 << 20), 32 << 20)))

    x_specs = [pl.BlockSpec((tm, x.shape[1]), lambda i, j: (i, 0)) for x in xs_p]
    w_specs = [pl.BlockSpec((w.shape[0], tn), lambda i, j: (0, j)) for w in ws_p]
    b_spec = pl.BlockSpec((1, tn), lambda i, j: (0, j))

    y = pl.pallas_call(
        _make_proj_kernel(n_in),
        out_shape=jax.ShapeDtypeStruct((Mp, Np), out_dtype),
        grid_spec=pltpu.PrefetchScalarGridSpec(
            num_scalar_prefetch=0,
            grid=(Mp // tm, Np // tn),
            in_specs=x_specs + w_specs + [b_spec],
            out_specs=pl.BlockSpec((tm, tn), lambda i, j: (i, j)),
        ),
        compiler_params=pltpu.CompilerParams(
            dimension_semantics=("parallel", "parallel"),
            vmem_limit_bytes=vmem_limit),
    )(*(xs_p + ws_p + [bp]))

    if Mp != M:
        y = y[:M]
    return y


# ----------------------------------------------------------------------------
# Fused bidirectional recurrent kernel. Grid = time chunks (sequential ->
# "arbitrary"); inside each chunk a bounded-unroll fori_loop walks Tc steps.
# Both directions share ONE h/c scratch of shape (2B, Hp) and ONE recurrent
# matmul (2B,Hp) @ (Hp,2Gp) per step. The backward direction's gate block is
# selected by a reversed index_map and indexed [Tc-1-s] in-kernel; its outputs
# are written back in natural time order (no wrapper flips).
# Gate order matches PyTorch: i, f, g, o.
# ----------------------------------------------------------------------------
def _bilstm_rec_kernel(gf_ref, gb_ref, w_ref, of_ref, ob_ref, h_scr, c_scr):
    @pl.when(pl.program_id(0) == 0)
    def _():
        h_scr[...] = jnp.zeros_like(h_scr)
        c_scr[...] = jnp.zeros_like(c_scr)

    Tc, B, Gp = gf_ref.shape
    Hp = h_scr.shape[1]

    def step(s, carry):
        # One MXU call covers both directions (rows 0:B fwd, B:2B bwd).
        r = jnp.dot(h_scr[...].astype(w_ref.dtype), w_ref[...],
                    preferred_element_type=jnp.float32)            # (2B, 2Gp)
        g_f = gf_ref[s].astype(jnp.float32) + r[:B, :Gp]
        g_b = gb_ref[Tc - 1 - s].astype(jnp.float32) + r[B:, Gp:]
        g = jnp.concatenate([g_f, g_b], axis=0)                    # (2B, Gp)
        i_g = _sigmoid(g[:, 0 * Hp:1 * Hp])                        # f32 gate math
        f_g = _sigmoid(g[:, 1 * Hp:2 * Hp])
        g_g = jnp.tanh(g[:, 2 * Hp:3 * Hp])
        o_g = _sigmoid(g[:, 3 * Hp:4 * Hp])
        c_new = f_g * c_scr[...] + i_g * g_g
        h_new = o_g * jnp.tanh(c_new)
        c_scr[...] = c_new
        h_scr[...] = h_new
        of_ref[s] = h_new[:B].astype(of_ref.dtype)
        ob_ref[Tc - 1 - s] = h_new[B:].astype(ob_ref.dtype)
        return carry

    lax.fori_loop(0, Tc, step, 0, unroll=min(8, Tc))


def _pick_time_chunk(T, desired, per_step_bytes, fixed_bytes, budget):
    """Pick in-kernel time chunk Tc and (possibly padded) Tp within VMEM budget."""
    cap_tc = max(1, (budget - fixed_bytes) // max(per_step_bytes, 1))
    want = int(max(1, min(desired, T, cap_tc)))
    tc = want
    while tc > 1 and T % tc:          # prefer a divisor of T -> no padding pass
        tc -= 1
    if tc * 4 >= want:
        return tc, T
    return want, _round_up(T, want)   # fallback: zero-padded time tail


def _bilstm_recurrence(gates, w_all, T, B, Hp, *, out_dtype, time_chunk):
    """gates: (T, B, 2*Gp) [fwd | bwd pre-activations], w_all: (Hp, 2*Gp).
    Returns (h_f, h_b), each (T, B, Hp) in natural time order."""
    Gp = 4 * Hp
    gsz = np.dtype(gates.dtype).itemsize
    osz = np.dtype(out_dtype).itemsize
    csz = np.dtype(w_all.dtype).itemsize

    budget = int(0.75 * _VMEM_CAP)                      # leave headroom (v7x!)
    fixed = 2 * (Hp * 2 * Gp * csz) + 2 * (2 * B * Hp * 4)
    per_step = 2 * (2 * B * Gp * gsz) + 2 * (2 * B * Hp * osz)
    Tc, Tp = _pick_time_chunk(T, time_chunk, per_step, fixed, budget)

    if Tp != T:
        # Zero gates keep a zero state at zero, so the bwd direction's padded
        # prefix (it runs time Tp-1 .. T first) is a provable no-op.
        gates = jnp.pad(gates, ((0, Tp - T), (0, 0), (0, 0)))
    nc = Tp // Tc

    vmem_limit = int(min(0.9 * _VMEM_CAP,
                         max(fixed + Tc * per_step + (16 << 20), 32 << 20)))

    out_f, out_b = pl.pallas_call(
        _bilstm_rec_kernel,
        out_shape=(jax.ShapeDtypeStruct((Tp, B, Hp), out_dtype),
                   jax.ShapeDtypeStruct((Tp, B, Hp), out_dtype)),
        grid_spec=pltpu.PrefetchScalarGridSpec(
            num_scalar_prefetch=0,
            grid=(nc,),
            in_specs=[
                # fwd gates: time chunk c, first Gp lanes of the shared tensor
                pl.BlockSpec((Tc, B, Gp), lambda c: (c, 0, 0)),
                # bwd gates: time-reversed chunk, second Gp lanes (no jnp.flip)
                pl.BlockSpec((Tc, B, Gp), lambda c: (nc - 1 - c, 0, 1)),
                # resident recurrent weights for both directions
                pl.BlockSpec((Hp, 2 * Gp), lambda c: (0, 0)),
            ],
            out_specs=[
                pl.BlockSpec((Tc, B, Hp), lambda c: (c, 0, 0)),
                pl.BlockSpec((Tc, B, Hp), lambda c: (nc - 1 - c, 0, 0)),
            ],
            scratch_shapes=[pltpu.VMEM((2 * B, Hp), jnp.float32),
                            pltpu.VMEM((2 * B, Hp), jnp.float32)],
        ),
        compiler_params=pltpu.CompilerParams(
            dimension_semantics=("arbitrary",),          # true recurrence
            vmem_limit_bytes=vmem_limit),
    )(gates, gates, w_all)

    if Tp != T:
        out_f = out_f[:T]
        out_b = out_b[:T]
    return out_f, out_b


# ----------------------------------------------------------------------------
# One bidirectional LSTM layer: hoisted input projection + fused recurrence.
# ----------------------------------------------------------------------------
def _pad_gate_cols(m, H, Hp):
    """(rows, 4H) -> (rows, 4Hp): zero-pad each PyTorch gate slab (i,f,g,o)."""
    if Hp == H:
        return m
    out = jnp.zeros((m.shape[0], 4 * Hp), m.dtype)
    for k in range(4):
        out = out.at[:, k * Hp:k * Hp + H].set(m[:, k * H:(k + 1) * H])
    return out


def _bilstm_layer(xs, widths, p, Hp, *, compute_dtype, stream_dtype, time_chunk):
    """xs: list of time-major (T, B, W_i) inputs whose concat (first widths[i]
    valid columns each) is the layer input. Returns (h_f, h_b): (T, B, Hp)."""
    T, B = xs[0].shape[:2]
    w_ih_f, w_hh_f, b_ih_f, b_hh_f = p["fwd"]
    w_ih_b, w_hh_b, b_ih_b, b_hh_b = p["bwd"]
    H = w_hh_f.shape[1]
    Gp = 4 * Hp

    # --- hoisted input projection for BOTH directions, all timesteps --------
    ws = []
    off = 0
    for x, wv in zip(xs, widths):
        wa = x.shape[2]
        blk_f = _pad_gate_cols(w_ih_f[:, off:off + wv].T, H, Hp)   # (wv, Gp)
        blk_b = _pad_gate_cols(w_ih_b[:, off:off + wv].T, H, Hp)
        w = jnp.concatenate([blk_f, blk_b], axis=1)                # (wv, 2Gp)
        if wa != wv:                                               # padded h lanes
            w = jnp.pad(w, ((0, wa - wv), (0, 0)))
        ws.append(w)
        off += wv
    bias = jnp.concatenate([
        _pad_gate_cols((b_ih_f + b_hh_f)[None, :], H, Hp)[0],
        _pad_gate_cols((b_ih_b + b_hh_b)[None, :], H, Hp)[0]])     # (2Gp,)

    xs_flat = [x.reshape(T * B, x.shape[2]) for x in xs]
    gates = _projection(xs_flat, ws, bias, compute_dtype=compute_dtype,
                        out_dtype=stream_dtype)                    # (T*B, 2Gp)
    gates = gates.reshape(T, B, 2 * Gp)

    # --- recurrent weights: one (Hp, 2Gp) MXU operand for both directions ---
    whh_f = _pad_gate_cols(w_hh_f.T, H, Hp)
    whh_b = _pad_gate_cols(w_hh_b.T, H, Hp)
    if Hp != H:
        whh_f = jnp.pad(whh_f, ((0, Hp - H), (0, 0)))
        whh_b = jnp.pad(whh_b, ((0, Hp - H), (0, 0)))
    w_all = jnp.concatenate([whh_f, whh_b], axis=1).astype(compute_dtype)

    return _bilstm_recurrence(gates, w_all, T, B, Hp,
                              out_dtype=stream_dtype, time_chunk=time_chunk)


# ----------------------------------------------------------------------------
# Full model forward (matches BLSTMConversionModel.forward).
# ----------------------------------------------------------------------------
def blstm_conversion_forward(x, params, *, compute_dtype=jnp.float32,
                             time_chunk=64):
    T, B, F = x.shape
    bf16 = np.dtype(compute_dtype) == np.dtype(jnp.bfloat16)
    stream_dtype = jnp.bfloat16 if bf16 else jnp.float32
    H = params["blstm1"]["fwd"][1].shape[1]
    # 128-lane aligned gate slabs when affordable, else 32-lane multiples.
    Hp = _round_up(H, 128) if H >= 128 else _round_up(H, 32)

    h1f, h1b = _bilstm_layer([x], [F], params["blstm1"], Hp,
                             compute_dtype=compute_dtype,
                             stream_dtype=stream_dtype, time_chunk=time_chunk)
    h2f, h2b = _bilstm_layer([h1f, h1b], [H, H], params["blstm2"], Hp,
                             compute_dtype=compute_dtype,
                             stream_dtype=stream_dtype, time_chunk=time_chunk)

    # Output Linear consumes the two direction streams directly (no concat):
    # y = h_f @ Wp[:, :H].T + h_b @ Wp[:, H:].T + b
    proj_w, proj_b = params["proj_w"], params["proj_b"]
    out_ch = proj_w.shape[0]
    wp_f = proj_w[:, :H].T
    wp_b = proj_w[:, H:].T
    if Hp != H:
        wp_f = jnp.pad(wp_f, ((0, Hp - H), (0, 0)))
        wp_b = jnp.pad(wp_b, ((0, Hp - H), (0, 0)))
    y = _projection([h2f.reshape(T * B, Hp), h2b.reshape(T * B, Hp)],
                    [wp_f, wp_b], proj_b,
                    compute_dtype=compute_dtype, out_dtype=jnp.float32)
    if y.shape[1] != out_ch:
        y = y[:, :out_ch]
    return y.reshape(T, B, out_ch)


# ----------------------------------------------------------------------------
# Deterministic parameter init (PyTorch-style uniform(-1/sqrt(H), 1/sqrt(H))).
# ----------------------------------------------------------------------------
def init_params(key, in_channels, out_channels, lstm_hidden):
    H = lstm_hidden
    k = 1.0 / np.sqrt(H)

    def uni(key, shape):
        return jax.random.uniform(key, shape, jnp.float32, minval=-k, maxval=k)

    def lstm_layer(key, input_size):
        keys = jax.random.split(key, 8)
        fwd = (uni(keys[0], (4 * H, input_size)), uni(keys[1], (4 * H, H)),
               uni(keys[2], (4 * H,)), uni(keys[3], (4 * H,)))
        bwd = (uni(keys[4], (4 * H, input_size)), uni(keys[5], (4 * H, H)),
               uni(keys[6], (4 * H,)), uni(keys[7], (4 * H,)))
        return {"fwd": fwd, "bwd": bwd}

    k1, k2, k3, k4 = jax.random.split(key, 4)
    return {
        "blstm1": lstm_layer(k1, in_channels),
        "blstm2": lstm_layer(k2, 2 * H),
        "proj_w": uni(k3, (out_channels, 2 * H)),
        "proj_b": uni(k4, (out_channels,)),
    }


# ----------------------------------------------------------------------------
# Pure-JAX reference (lax.scan) for correctness checking.
# ----------------------------------------------------------------------------
def _ref_lstm_dir(x, w_ih, w_hh, b_ih, b_hh, reverse):
    T, B, _ = x.shape
    H = w_hh.shape[1]
    xs = jnp.flip(x, axis=0) if reverse else x

    def step(carry, x_t):
        h, c = carry
        g = x_t @ w_ih.T + b_ih + h @ w_hh.T + b_hh
        i = jax.nn.sigmoid(g[:, 0 * H:1 * H])
        f = jax.nn.sigmoid(g[:, 1 * H:2 * H])
        gg = jnp.tanh(g[:, 2 * H:3 * H])
        o = jax.nn.sigmoid(g[:, 3 * H:4 * H])
        c = f * c + i * gg
        h = o * jnp.tanh(c)
        return (h, c), h

    init = (jnp.zeros((B, H), jnp.float32), jnp.zeros((B, H), jnp.float32))
    _, hs = lax.scan(step, init, xs)
    return jnp.flip(hs, axis=0) if reverse else hs


def _ref_forward(x, params):
    def bilstm(x, p):
        return jnp.concatenate(
            [_ref_lstm_dir(x, *p["fwd"], False), _ref_lstm_dir(x, *p["bwd"], True)],
            axis=-1,
        )

    h = bilstm(bilstm(x, params["blstm1"]), params["blstm2"])
    return h @ params["proj_w"].T + params["proj_b"]


if __name__ == "__main__":
    T, B = 8, 2
    in_channels, out_channels, lstm_hidden = 16, 8, 32

    key = jax.random.PRNGKey(0)
    kx, kp = jax.random.split(key)
    x = jax.random.normal(kx, (T, B, in_channels), jnp.float32)
    params = init_params(kp, in_channels, out_channels, lstm_hidden)

    # f32 compute: tight check against the lax.scan reference.
    fwd = jax.jit(functools.partial(blstm_conversion_forward, params=params))
    out = jax.block_until_ready(fwd(x))
    ref = _ref_forward(x, params)
    np.testing.assert_allclose(np.asarray(out), np.asarray(ref),
                               atol=5e-4, rtol=5e-4)
    assert out.shape == (T, B, out_channels)

    # bf16 streaming (f32 accumulation + f32 gate/state math): loose check.
    fwd_bf16 = jax.jit(functools.partial(
        blstm_conversion_forward, params=params, compute_dtype=jnp.bfloat16))
    out_bf16 = jax.block_until_ready(fwd_bf16(x))
    np.testing.assert_allclose(np.asarray(out_bf16), np.asarray(ref),
                               atol=1.5e-1, rtol=1e-1)

    print("KERNEL_OK")
</pallas_src>

<mosaic_0001>
module attributes {stable_mosaic.version = 11 : i64} {
  func.func @kernel(%arg0: i32, %arg1: i32, %arg2: memref<16x16xf32, #tpu.memory_space<vmem>>, %arg3: memref<16x256xf32, #tpu.memory_space<vmem>>, %arg4: memref<1x256xf32, #tpu.memory_space<vmem>>, %arg5: memref<16x256xf32, #tpu.memory_space<vmem>>) attributes {dimension_semantics = [#tpu.dimension_semantics<parallel>, #tpu.dimension_semantics<parallel>], iteration_bounds = array<i64: 1, 1>, scalar_prefetch = 0 : i64, scratch_operands = 0 : i64, tpu.core_type = #tpu.core_type<tc>, window_params = [{transform_indices = @transform_0, window_bounds = array<i64: 16, 16>}, {transform_indices = @transform_1, window_bounds = array<i64: 16, 256>}, {transform_indices = @transform_2, window_bounds = array<i64: 1, 256>}, {transform_indices = @transform_3, window_bounds = array<i64: 16, 256>}]} {
    %c0 = arith.constant 0 : index
    %c0_0 = arith.constant 0 : index
    %0 = vector.load %arg2[%c0, %c0_0] : memref<16x16xf32, #tpu.memory_space<vmem>>, vector<16x16xf32>
    %c0_1 = arith.constant 0 : index
    %c0_2 = arith.constant 0 : index
    %1 = vector.load %arg3[%c0_1, %c0_2] : memref<16x256xf32, #tpu.memory_space<vmem>>, vector<16x256xf32>
    %cst = arith.constant dense<0.000000e+00> : vector<16x256xf32>
    %2 = tpu.matmul %0, %1, %cst {dimension_numbers = #tpu.dot_dimension_numbers<[1], [0], [0], [1], [0, 0, 1, 1], [], []>} : vector<16x16xf32>, vector<16x256xf32>, vector<16x256xf32> -> vector<16x256xf32>
    %c0_3 = arith.constant 0 : index
    %c0_4 = arith.constant 0 : index
    %3 = vector.load %arg4[%c0_3, %c0_4] : memref<1x256xf32, #tpu.memory_space<vmem>>, vector<1x256xf32>
    %4 = vector.broadcast %3 : vector<1x256xf32> to vector<16x256xf32>
    %5 = arith.addf %2, %4 : vector<16x256xf32>
    %c0_5 = arith.constant 0 : index
    %c0_6 = arith.constant 0 : index
    %6 = vector.load %arg5[%c0_5, %c0_6] : memref<16x256xf32, #tpu.memory_space<vmem>>, vector<16x256xf32>
    tpu.vector_store %arg5[%c0_5, %c0_6], %5 {strides = array<i32>} : memref<16x256xf32, #tpu.memory_space<vmem>>, vector<16x256xf32>,
    return
  }
  func.func @transform_0(%arg0: i32, %arg1: i32) -> (i32, i32) {
    %c0_i32 = arith.constant 0 : i32
    %c0_i32_0 = arith.constant 0 : i32
    return %arg0, %c0_i32 : i32, i32
  }
  func.func @transform_1(%arg0: i32, %arg1: i32) -> (i32, i32) {
    %c0_i32 = arith.constant 0 : i32
    %c0_i32_0 = arith.constant 0 : i32
    return %c0_i32, %arg1 : i32, i32
  }
  func.func @transform_2(%arg0: i32, %arg1: i32) -> (i32, i32) {
    %c0_i32 = arith.constant 0 : i32
    %c0_i32_0 = arith.constant 0 : i32
    return %c0_i32, %arg1 : i32, i32
  }
  func.func @transform_3(%arg0: i32, %arg1: i32) -> (i32, i32) {
    %c0_i32 = arith.constant 0 : i32
    return %arg0, %arg1 : i32, i32
  }
}

module attributes {stable_mosaic.version = 11 : i64} {
  func.func @kernel(%arg0: i32, %arg1: i32, %arg2: memref<16x32xf32, #tpu.memory_space<vmem>>, %arg3: memref<16x32xf32, #tpu.memory_space<vmem>>, %arg4: memref<32x256xf32, #tpu.memory_space<vmem>>, %arg5: memref<32x256xf32, #tpu.memory_space<vmem>>, %arg6: memref<1x256xf32, #tpu.memory_space<vmem>>, %arg7: memref<16x256xf32, #tpu.memory_space<vmem>>) attributes {dimension_semantics = [#tpu.dimension_semantics<parallel>, #tpu.dimension_semantics<parallel>], iteration_bounds = array<i64: 1, 1>, scalar_prefetch = 0 : i64, scratch_operands = 0 : i64, tpu.core_type = #tpu.core_type<tc>, window_params = [{transform_indices = @transform_0, window_bounds = array<i64: 16, 32>}, {transform_indices = @transform_1, window_bounds = array<i64: 16, 32>}, {transform_indices = @transform_2, window_bounds = array<i64: 32, 256>}, {transform_indices = @transform_3, window_bounds = array<i64: 32, 256>}, {transform_indices = @transform_4, window_bounds = array<i64: 1, 256>}, {transform_indices = @transform_5, window_bounds = array<i64: 16, 256>}]} {
    %c0 = arith.constant 0 : index
    %c0_0 = arith.constant 0 : index
    %0 = vector.load %arg2[%c0, %c0_0] : memref<16x32xf32, #tpu.memory_space<vmem>>, vector<16x32xf32>
    %c0_1 = arith.constant 0 : index
    %c0_2 = arith.constant 0 : index
    %1 = vector.load %arg4[%c0_1, %c0_2] : memref<32x256xf32, #tpu.memory_space<vmem>>, vector<32x256xf32>
    %cst = arith.constant dense<0.000000e+00> : vector<16x256xf32>
    %2 = tpu.matmul %0, %1, %cst {dimension_numbers = #tpu.dot_dimension_numbers<[1], [0], [0], [1], [0, 0, 1, 1], [], []>} : vector<16x32xf32>, vector<32x256xf32>, vector<16x256xf32> -> vector<16x256xf32>
    %c0_3 = arith.constant 0 : index
    %c0_4 = arith.constant 0 : index
    %3 = vector.load %arg3[%c0_3, %c0_4] : memref<16x32xf32, #tpu.memory_space<vmem>>, vector<16x32xf32>
    %c0_5 = arith.constant 0 : index
    %c0_6 = arith.constant 0 : index
    %4 = vector.load %arg5[%c0_5, %c0_6] : memref<32x256xf32, #tpu.memory_space<vmem>>, vector<32x256xf32>
    %cst_7 = arith.constant dense<0.000000e+00> : vector<16x256xf32>
    %5 = tpu.matmul %3, %4, %cst_7 {dimension_numbers = #tpu.dot_dimension_numbers<[1], [0], [0], [1], [0, 0, 1, 1], [], []>} : vector<16x32xf32>, vector<32x256xf32>, vector<16x256xf32> -> vector<16x256xf32>
    %6 = arith.addf %2, %5 : vector<16x256xf32>
    %c0_8 = arith.constant 0 : index
    %c0_9 = arith.constant 0 : index
    %7 = vector.load %arg6[%c0_8, %c0_9] : memref<1x256xf32, #tpu.memory_space<vmem>>, vector<1x256xf32>
    %8 = vector.broadcast %7 : vector<1x256xf32> to vector<16x256xf32>
    %9 = arith.addf %6, %8 : vector<16x256xf32>
    %c0_10 = arith.constant 0 : index
    %c0_11 = arith.constant 0 : index
    %10 = vector.load %arg7[%c0_10, %c0_11] : memref<16x256xf32, #tpu.memory_space<vmem>>, vector<16x256xf32>
    tpu.vector_store %arg7[%c0_10, %c0_11], %9 {strides = array<i32>} : memref<16x256xf32, #tpu.memory_space<vmem>>, vector<16x256xf32>,
    return
  }
  func.func @transform_0(%arg0: i32, %arg1: i32) -> (i32, i32) {
    %c0_i32 = arith.constant 0 : i32
    %c0_i32_0 = arith.constant 0 : i32
    return %arg0, %c0_i32 : i32, i32
  }
  func.func @transform_1(%arg0: i32, %arg1: i32) -> (i32, i32) {
    %c0_i32 = arith.constant 0 : i32
    %c0_i32_0 = arith.constant 0 : i32
    return %arg0, %c0_i32 : i32, i32
  }
  func.func @transform_2(%arg0: i32, %arg1: i32) -> (i32, i32) {
    %c0_i32 = arith.constant 0 : i32
    %c0_i32_0 = arith.constant 0 : i32
    return %c0_i32, %arg1 : i32, i32
  }
  func.func @transform_3(%arg0: i32, %arg1: i32) -> (i32, i32) {
    %c0_i32 = arith.constant 0 : i32
    %c0_i32_0 = arith.constant 0 : i32
    return %c0_i32, %arg1 : i32, i32
  }
  func.func @transform_4(%arg0: i32, %arg1: i32) -> (i32, i32) {
    %c0_i32 = arith.constant 0 : i32
    %c0_i32_0 = arith.constant 0 : i32
    return %c0_i32, %arg1 : i32, i32
  }
  func.func @transform_5(%arg0: i32, %arg1: i32) -> (i32, i32) {
    %c0_i32 = arith.constant 0 : i32
    return %arg0, %arg1 : i32, i32
  }
}

module attributes {stable_mosaic.version = 11 : i64} {
  func.func @_bilstm_rec_kernel(%arg0: i32, %arg1: memref<8x2x128xf32, #tpu.memory_space<vmem>>, %arg2: memref<8x2x128xf32, #tpu.memory_space<vmem>>, %arg3: memref<32x256xf32, #tpu.memory_space<vmem>>, %arg4: memref<8x2x32xf32, #tpu.memory_space<vmem>>, %arg5: memref<8x2x32xf32, #tpu.memory_space<vmem>>, %arg6: memref<4x32xf32, #tpu.memory_space<vmem>>, %arg7: memref<4x32xf32, #tpu.memory_space<vmem>>) attributes {dimension_semantics = [#tpu.dimension_semantics<arbitrary>], iteration_bounds = array<i64: 1>, scalar_prefetch = 0 : i64, scratch_operands = 2 : i64, tpu.core_type = #tpu.core_type<tc>, window_params = [{transform_indices = @transform_0, window_bounds = array<i64: 8, 2, 128>}, {transform_indices = @transform_1, window_bounds = array<i64: 8, 2, 128>}, {pipeline_mode = #tpu.pipeline_mode<synchronous>, transform_indices = @transform_2, window_bounds = array<i64: 32, 256>}, {transform_indices = @transform_3, window_bounds = array<i64: 8, 2, 32>}, {transform_indices = @transform_4, window_bounds = array<i64: 8, 2, 32>}]} {
    %c0_i32 = arith.constant 0 : i32
    %0 = arith.cmpi eq, %arg0, %c0_i32 : i32
    %1 = arith.extui %0 : i1 to i32
    %c0_i32_0 = arith.constant 0 : i32
    %2 = arith.cmpi ne, %1, %c0_i32_0 : i32
    scf.if %2 {
      %cst_240 = arith.constant 0.000000e+00 : f32
      %483 = vector.broadcast %cst_240 : f32 to vector<4x32xf32>
      %c0_241 = arith.constant 0 : index
      %c0_242 = arith.constant 0 : index
      %484 = vector.load %arg6[%c0_241, %c0_242] : memref<4x32xf32, #tpu.memory_space<vmem>>, vector<4x32xf32>
      tpu.vector_store %arg6[%c0_241, %c0_242], %483 {strides = array<i32>} : memref<4x32xf32, #tpu.memory_space<vmem>>, vector<4x32xf32>,
      %cst_243 = arith.constant 0.000000e+00 : f32
      %485 = vector.broadcast %cst_243 : f32 to vector<4x32xf32>
      %c0_244 = arith.constant 0 : index
      %c0_245 = arith.constant 0 : index
      %486 = vector.load %arg7[%c0_244, %c0_245] : memref<4x32xf32, #tpu.memory_space<vmem>>, vector<4x32xf32>
      tpu.vector_store %arg7[%c0_244, %c0_245], %485 {strides = array<i32>} : memref<4x32xf32, #tpu.memory_space<vmem>>, vector<4x32xf32>,
    } else {
    }
    %c0_i32_1 = arith.constant 0 : i32
    %c0 = arith.constant 0 : index
    %c0_2 = arith.constant 0 : index
    %3 = vector.load %arg6[%c0, %c0_2] : memref<4x32xf32, #tpu.memory_space<vmem>>, vector<4x32xf32>
    %c0_3 = arith.constant 0 : index
    %c0_4 = arith.constant 0 : index
    %4 = vector.load %arg3[%c0_3, %c0_4] : memref<32x256xf32, #tpu.memory_space<vmem>>, vector<32x256xf32>
    %cst = arith.constant dense<0.000000e+00> : vector<4x256xf32>
    %5 = tpu.matmul %3, %4, %cst {dimension_numbers = #tpu.dot_dimension_numbers<[1], [0], [0], [1], [0, 0, 1, 1], [], []>} : vector<4x32xf32>, vector<32x256xf32>, vector<4x256xf32> -> vector<4x256xf32>
    %6 = arith.index_cast %c0_i32_1 : i32 to index
    %c0_5 = arith.constant 0 : index
    %c0_6 = arith.constant 0 : index
    %7 = vector.load %arg1[%6, %c0_5, %c0_6] : memref<8x2x128xf32, #tpu.memory_space<vmem>>, vector<1x2x128xf32>
    %8 = vector.shape_cast %7 : vector<1x2x128xf32> to vector<2x128xf32>
    %9 = vector.extract_strided_slice %5 {offsets = [0, 0], sizes = [2, 128], strides = [1, 1]} : vector<4x256xf32> to vector<2x128xf32>
    %10 = arith.addf %8, %9 : vector<2x128xf32>
    %c7_i32 = arith.constant 7 : i32
    %11 = arith.subi %c7_i32, %c0_i32_1 : i32
    %12 = arith.index_cast %11 : i32 to index
    %c0_7 = arith.constant 0 : index
    %c0_8 = arith.constant 0 : index
    %13 = vector.load %arg2[%12, %c0_7, %c0_8] : memref<8x2x128xf32, #tpu.memory_space<vmem>>, vector<1x2x128xf32>
    %14 = vector.shape_cast %13 : vector<1x2x128xf32> to vector<2x128xf32>
    %15 = vector.extract_strided_slice %5 {offsets = [2, 128], sizes = [2, 128], strides = [1, 1]} : vector<4x256xf32> to vector<2x128xf32>
    %16 = arith.addf %14, %15 : vector<2x128xf32>
    %17 = tpu.concatenate %10, %16 in 0 : vector<2x128xf32>, vector<2x128xf32> -> vector<4x128xf32>
    %18 = vector.extract_strided_slice %17 {offsets = [0, 0], sizes = [4, 32], strides = [1, 1]} : vector<4x128xf32> to vector<4x32xf32>
    %cst_9 = arith.constant 5.000000e-01 : f32
    %19 = vector.broadcast %cst_9 : f32 to vector<4x32xf32>
    %20 = arith.mulf %19, %18 : vector<4x32xf32>
    %21 = math.tanh %20 : vector<4x32xf32>
    %cst_10 = arith.constant 5.000000e-01 : f32
    %22 = vector.broadcast %cst_10 : f32 to vector<4x32xf32>
    %23 = arith.mulf %22, %21 : vector<4x32xf32>
    %cst_11 = arith.constant 5.000000e-01 : f32
    %24 = vector.broadcast %cst_11 : f32 to vector<4x32xf32>
    %25 = arith.addf %23, %24 : vector<4x32xf32>
    %26 = vector.extract_strided_slice %17 {offsets = [0, 32], sizes = [4, 32], strides = [1, 1]} : vector<4x128xf32> to vector<4x32xf32>
    %cst_12 = arith.constant 5.000000e-01 : f32
    %27 = vector.broadcast %cst_12 : f32 to vector<4x32xf32>
    %28 = arith.mulf %27, %26 : vector<4x32xf32>
    %29 = math.tanh %28 : vector<4x32xf32>
    %cst_13 = arith.constant 5.000000e-01 : f32
    %30 = vector.broadcast %cst_13 : f32 to vector<4x32xf32>
    %31 = arith.mulf %30, %29 : vector<4x32xf32>
    %cst_14 = arith.constant 5.000000e-01 : f32
    %32 = vector.broadcast %cst_14 : f32 to vector<4x32xf32>
    %33 = arith.addf %31, %32 : vector<4x32xf32>
    %34 = vector.extract_strided_slice %17 {offsets = [0, 64], sizes = [4, 32], strides = [1, 1]} : vector<4x128xf32> to vector<4x32xf32>
    %35 = math.tanh %34 : vector<4x32xf32>
    %36 = vector.extract_strided_slice %17 {offsets = [0, 96], sizes = [4, 32], strides = [1, 1]} : vector<4x128xf32> to vector<4x32xf32>
    %cst_15 = arith.constant 5.000000e-01 : f32
    %37 = vector.broadcast %cst_15 : f32 to vector<4x32xf32>
    %38 = arith.mulf %37, %36 : vector<4x32xf32>
    %39 = math.tanh %38 : vector<4x32xf32>
    %cst_16 = arith.constant 5.000000e-01 : f32
    %40 = vector.broadcast %cst_16 : f32 to vector<4x32xf32>
    %41 = arith.mulf %40, %39 : vector<4x32xf32>
    %cst_17 = arith.constant 5.000000e-01 : f32
    %42 = vector.broadcast %cst_17 : f32 to vector<4x32xf32>
    %43 = arith.addf %41, %42 : vector<4x32xf32>
    %c0_18 = arith.constant 0 : index
    %c0_19 = arith.constant 0 : index
    %44 = vector.load %arg7[%c0_18, %c0_19] : memref<4x32xf32, #tpu.memory_space<vmem>>, vector<4x32xf32>
    %45 = arith.mulf %33, %44 : vector<4x32xf32>
    %46 = arith.mulf %25, %35 : vector<4x32xf32>
    %47 = arith.addf %45, %46 : vector<4x32xf32>
    %48 = math.tanh %47 : vector<4x32xf32>
    %49 = arith.mulf %43, %48 : vector<4x32xf32>
    %c0_20 = arith.constant 0 : index
    %c0_21 = arith.constant 0 : index
    %50 = vector.load %arg7[%c0_20, %c0_21] : memref<4x32xf32, #tpu.memory_space<vmem>>, vector<4x32xf32>
    tpu.vector_store %arg7[%c0_20, %c0_21], %47 {strides = array<i32>} : memref<4x32xf32, #tpu.memory_space<vmem>>, vector<4x32xf32>,
    %c0_22 = arith.constant 0 : index
    %c0_23 = arith.constant 0 : index
    %51 = vector.load %arg6[%c0_22, %c0_23] : memref<4x32xf32, #tpu.memory_space<vmem>>, vector<4x32xf32>
    tpu.vector_store %arg6[%c0_22, %c0_23], %49 {strides = array<i32>} : memref<4x32xf32, #tpu.memory_space<vmem>>, vector<4x32xf32>,
    %52 = vector.extract_strided_slice %49 {offsets = [0, 0], sizes = [2, 32], strides = [1, 1]} : vector<4x32xf32> to vector<2x32xf32>
    %53 = arith.index_cast %c0_i32_1 : i32 to index
    %c0_24 = arith.constant 0 : index
    %c0_25 = arith.constant 0 : index
    %54 = vector.load %arg4[%53, %c0_24, %c0_25] : memref<8x2x32xf32, #tpu.memory_space<vmem>>, vector<1x2x32xf32>
    %55 = vector.shape_cast %54 : vector<1x2x32xf32> to vector<2x32xf32>
    %56 = vector.shape_cast %52 : vector<2x32xf32> to vector<1x2x32xf32>
    tpu.vector_store %arg4[%53, %c0_24, %c0_25], %56 {strides = array<i32>} : memref<8x2x32xf32, #tpu.memory_space<vmem>>, vector<1x2x32xf32>,
    %57 = vector.extract_strided_slice %49 {offsets = [2, 0], sizes = [2, 32], strides = [1, 1]} : vector<4x32xf32> to vector<2x32xf32>
    %c7_i32_26 = arith.constant 7 : i32
    %58 = arith.subi %c7_i32_26, %c0_i32_1 : i32
    %59 = arith.index_cast %58 : i32 to index
    %c0_27 = arith.constant 0 : index
    %c0_28 = arith.constant 0 : index
    %60 = vector.load %arg5[%59, %c0_27, %c0_28] : memref<8x2x32xf32, #tpu.memory_space<vmem>>, vector<1x2x32xf32>
    %61 = vector.shape_cast %60 : vector<1x2x32xf32> to vector<2x32xf32>
    %62 = vector.shape_cast %57 : vector<2x32xf32> to vector<1x2x32xf32>
    tpu.vector_store %arg5[%59, %c0_27, %c0_28], %62 {strides = array<i32>} : memref<8x2x32xf32, #tpu.memory_space<vmem>>, vector<1x2x32xf32>,
    %c1_i32 = arith.constant 1 : i32
    %c0_29 = arith.constant 0 : index
    %c0_30 = arith.constant 0 : index
    %63 = vector.load %arg6[%c0_29, %c0_30] : memref<4x32xf32, #tpu.memory_space<vmem>>, vector<4x32xf32>
    %c0_31 = arith.constant 0 : index
    %c0_32 = arith.constant 0 : index
    %64 = vector.load %arg3[%c0_31, %c0_32] : memref<32x256xf32, #tpu.memory_space<vmem>>, vector<32x256xf32>
    %cst_33 = arith.constant dense<0.000000e+00> : vector<4x256xf32>
    %65 = tpu.matmul %63, %64, %cst_33 {dimension_numbers = #tpu.dot_dimension_numbers<[1], [0], [0], [1], [0, 0, 1, 1], [], []>} : vector<4x32xf32>, vector<32x256xf32>, vector<4x256xf32> -> vector<4x256xf32>
    %66 = arith.index_cast %c1_i32 : i32 to index
    %c0_34 = arith.constant 0 : index
    %c0_35 = arith.constant 0 : index
    %67 = vector.load %arg1[%66, %c0_34, %c0_35] : memref<8x2x128xf32, #tpu.memory_space<vmem>>, vector<1x2x128xf32>
    %68 = vector.shape_cast %67 : vector<1x2x128xf32> to vector<2x128xf32>
    %69 = vector.extract_strided_slice %65 {offsets = [0, 0], sizes = [2, 128], strides = [1, 1]} : vector<4x256xf32> to vector<2x128xf32>
    %70 = arith.addf %68, %69 : vector<2x128xf32>
    %c7_i32_36 = arith.constant 7 : i32
    %71 = arith.subi %c7_i32_36, %c1_i32 : i32
    %72 = arith.index_cast %71 : i32 to index
    %c0_37 = arith.constant 0 : index
    %c0_38 = arith.constant 0 : index
    %73 = vector.load %arg2[%72, %c0_37, %c0_38] : memref<8x2x128xf32, #tpu.memory_space<vmem>>, vector<1x2x128xf32>
    %74 = vector.shape_cast %73 : vector<1x2x128xf32> to vector<2x128xf32>
    %75 = vector.extract_strided_slice %65 {offsets = [2, 128], sizes = [2, 128], strides = [1, 1]} : vector<4x256xf32> to vector<2x128xf32>
    %76 = arith.addf %74, %75 : vector<2x128xf32>
    %77 = tpu.concatenate %70, %76 in 0 : vector<2x128xf32>, vector<2x128xf32> -> vector<4x128xf32>
    %78 = vector.extract_strided_slice %77 {offsets = [0, 0], sizes = [4, 32], strides = [1, 1]} : vector<4x128xf32> to vector<4x32xf32>
    %cst_39 = arith.constant 5.000000e-01 : f32
    %79 = vector.broadcast %cst_39 : f32 to vector<4x32xf32>
    %80 = arith.mulf %79, %78 : vector<4x32xf32>
    %81 = math.tanh %80 : vector<4x32xf32>
    %cst_40 = arith.constant 5.000000e-01 : f32
    %82 = vector.broadcast %cst_40 : f32 to vector<4x32xf32>
    %83 = arith.mulf %82, %81 : vector<4x32xf32>
    %cst_41 = arith.constant 5.000000e-01 : f32
    %84 = vector.broadcast %cst_41 : f32 to vector<4x32xf32>
    %85 = arith.addf %83, %84 : vector<4x32xf32>
    %86 = vector.extract_strided_slice %77 {offsets = [0, 32], sizes = [4, 32], strides = [1, 1]} : vector<4x128xf32> to vector<4x32xf32>
    %cst_42 = arith.constant 5.000000e-01 : f32
    %87 = vector.broadcast %cst_42 : f32 to vector<4x32xf32>
    %88 = arith.mulf %87, %86 : vector<4x32xf32>
    %89 = math.tanh %88 : vector<4x32xf32>
    %cst_43 = arith.constant 5.000000e-01 : f32
    %90 = vector.broadcast %cst_43 : f32 to vector<4x32xf32>
    %91 = arith.mulf %90, %89 : vector<4x32xf32>
    %cst_44 = arith.constant 5.000000e-01 : f32
    %92 = vector.broadcast %cst_44 : f32 to vector<4x32xf32>
    %93 = arith.addf %91, %92 : vector<4x32xf32>
    %94 = vector.extract_strided_slice %77 {offsets = [0, 64], sizes = [4, 32], strides = [1, 1]} : vector<4x128xf32> to vector<4x32xf32>
    %95 = math.tanh %94 : vector<4x32xf32>
    %96 = vector.extract_strided_slice %77 {offsets = [0, 96], sizes = [4, 32], strides = [1, 1]} : vector<4x128xf32> to vector<4x32xf32>
    %cst_45 = arith.constant 5.000000e-01 : f32
    %97 = vector.broadcast %cst_45 : f32 to vector<4x32xf32>
    %98 = arith.mulf %97, %96 : vector<4x32xf32>
    %99 = math.tanh %98 : vector<4x32xf32>
    %cst_46 = arith.constant 5.000000e-01 : f32
    %100 = vector.broadcast %cst_46 : f32 to vector<4x32xf32>
    %101 = arith.mulf %100, %99 : vector<4x32xf32>
    %cst_47 = arith.constant 5.000000e-01 : f32
    %102 = vector.broadcast %cst_47 : f32 to vector<4x32xf32>
    %103 = arith.addf %101, %102 : vector<4x32xf32>
    %c0_48 = arith.constant 0 : index
    %c0_49 = arith.constant 0 : index
    %104 = vector.load %arg7[%c0_48, %c0_49] : memref<4x32xf32, #tpu.memory_space<vmem>>, vector<4x32xf32>
    %105 = arith.mulf %93, %104 : vector<4x32xf32>
    %106 = arith.mulf %85, %95 : vector<4x32xf32>
    %107 = arith.addf %105, %106 : vector<4x32xf32>
    %108 = math.tanh %107 : vector<4x32xf32>
    %109 = arith.mulf %103, %108 : vector<4x32xf32>
    %c0_50 = arith.constant 0 : index
    %c0_51 = arith.constant 0 : index
    %110 = vector.load %arg7[%c0_50, %c0_51] : memref<4x32xf32, #tpu.memory_space<vmem>>, vector<4x32xf32>
    tpu.vector_store %arg7[%c0_50, %c0_51], %107 {strides = array<i32>} : memref<4x32xf32, #tpu.memory_space<vmem>>, vector<4x32xf32>,
    %c0_52 = arith.constant 0 : index
    %c0_53 = arith.constant 0 : index
    %111 = vector.load %arg6[%c0_52, %c0_53] : memref<4x32xf32, #tpu.memory_space<vmem>>, vector<4x32xf32>
    tpu.vector_store %arg6[%c0_52, %c0_53], %109 {strides = array<i32>} : memref<4x32xf32, #tpu.memory_space<vmem>>, vector<4x32xf32>,
    %112 = vector.extract_strided_slice %109 {offsets = [0, 0], sizes = [2, 32], strides = [1, 1]} : vector<4x32xf32> to vector<2x32xf32>
    %113 = arith.index_cast %c1_i32 : i32 to index
    %c0_54 = arith.constant 0 : index
    %c0_55 = arith.constant 0 : index
    %114 = vector.load %arg4[%113, %c0_54, %c0_55] : memref<8x2x32xf32, #tpu.memory_space<vmem>>, vector<1x2x32xf32>
    %115 = vector.shape_cast %114 : vector<1x2x32xf32> to vector<2x32xf32>
    %116 = vector.shape_cast %112 : vector<2x32xf32> to vector<1x2x32xf32>
    tpu.vector_store %arg4[%113, %c0_54, %c0_55], %116 {strides = array<i32>} : memref<8x2x32xf32, #tpu.memory_space<vmem>>, vector<1x2x32xf32>,
    %117 = vector.extract_strided_slice %109 {offsets = [2, 0], sizes = [2, 32], strides = [1, 1]} : vector<4x32xf32> to vector<2x32xf32>
    %c7_i32_56 = arith.constant 7 : i32
    %118 = arith.subi %c7_i32_56, %c1_i32 : i32
    %119 = arith.index_cast %118 : i32 to index
    %c0_57 = arith.constant 0 : index
    %c0_58 = arith.constant 0 : index
    %120 = vector.load %arg5[%119, %c0_57, %c0_58] : memref<8x2x32xf32, #tpu.memory_space<vmem>>, vector<1x2x32xf32>
    %121 = vector.shape_cast %120 : vector<1x2x32xf32> to vector<2x32xf32>
    %122 = vector.shape_cast %117 : vector<2x32xf32> to vector<1x2x32xf32>
    tpu.vector_store %arg5[%119, %c0_57, %c0_58], %122 {strides = array<i32>} : memref<8x2x32xf32, #tpu.memory_space<vmem>>, vector<1x2x32xf32>,
    %c2_i32 = arith.constant 2 : i32
    %c0_59 = arith.constant 0 : index
    %c0_60 = arith.constant 0 : index
    %123 = vector.load %arg6[%c0_59, %c0_60] : memref<4x32xf32, #tpu.memory_space<vmem>>, vector<4x32xf32>
    %c0_61 = arith.constant 0 : index
    %c0_62 = arith.constant 0 : index
    %124 = vector.load %arg3[%c0_61, %c0_62] : memref<32x256xf32, #tpu.memory_space<vmem>>, vector<32x256xf32>
    %cst_63 = arith.constant dense<0.000000e+00> : vector<4x256xf32>
    %125 = tpu.matmul %123, %124, %cst_63 {dimension_numbers = #tpu.dot_dimension_numbers<[1], [0], [0], [1], [0, 0, 1, 1], [], []>} : vector<4x32xf32>, vector<32x256xf32>, vector<4x256xf32> -> vector<4x256xf32>
    %126 = arith.index_cast %c2_i32 : i32 to index
    %c0_64 = arith.constant 0 : index
    %c0_65 = arith.constant 0 : index
    %127 = vector.load %arg1[%126, %c0_64, %c0_65] : memref<8x2x128xf32, #tpu.memory_space<vmem>>, vector<1x2x128xf32>
    %128 = vector.shape_cast %127 : vector<1x2x128xf32> to vector<2x128xf32>
    %129 = vector.extract_strided_slice %125 {offsets = [0, 0], sizes = [2, 128], strides = [1, 1]} : vector<4x256xf32> to vector<2x128xf32>
    %130 = arith.addf %128, %129 : vector<2x128xf32>
    %c7_i32_66 = arith.constant 7 : i32
    %131 = arith.subi %c7_i32_66, %c2_i32 : i32
    %132 = arith.index_cast %131 : i32 to index
    %c0_67 = arith.constant 0 : index
    %c0_68 = arith.constant 0 : index
    %133 = vector.load %arg2[%132, %c0_67, %c0_68] : memref<8x2x128xf32, #tpu.memory_space<vmem>>, vector<1x2x128xf32>
    %134 = vector.shape_cast %133 : vector<1x2x128xf32> to vector<2x128xf32>
    %135 = vector.extract_strided_slice %125 {offsets = [2, 128], sizes = [2, 128], strides = [1, 1]} : vector<4x256xf32> to vector<2x128xf32>
    %136 = arith.addf %134, %135 : vector<2x128xf32>
    %137 = tpu.concatenate %130, %136 in 0 : vector<2x128xf32>, vector<2x128xf32> -> vector<4x128xf32>
    %138 = vector.extract_strided_slice %137 {offsets = [0, 0], sizes = [4, 32], strides = [1, 1]} : vector<4x128xf32> to vector<4x32xf32>
    %cst_69 = arith.constant 5.000000e-01 : f32
    %139 = vector.broadcast %cst_69 : f32 to vector<4x32xf32>
    %140 = arith.mulf %139, %138 : vector<4x32xf32>
    %141 = math.tanh %140 : vector<4x32xf32>
    %cst_70 = arith.constant 5.000000e-01 : f32
    %142 = vector.broadcast %cst_70 : f32 to vector<4x32xf32>
    %143 = arith.mulf %142, %141 : vector<4x32xf32>
    %cst_71 = arith.constant 5.000000e-01 : f32
    %144 = vector.broadcast %cst_71 : f32 to vector<4x32xf32>
    %145 = arith.addf %143, %144 : vector<4x32xf32>
    %146 = vector.extract_strided_slice %137 {offsets = [0, 32], sizes = [4, 32], strides = [1, 1]} : vector<4x128xf32> to vector<4x32xf32>
    %cst_72 = arith.constant 5.000000e-01 : f32
    %147 = vector.broadcast %cst_72 : f32 to vector<4x32xf32>
    %148 = arith.mulf %147, %146 : vector<4x32xf32>
    %149 = math.tanh %148 : vector<4x32xf32>
    %cst_73 = arith.constant 5.000000e-01 : f32
    %150 = vector.broadcast %cst_73 : f32 to vector<4x32xf32>
    %151 = arith.mulf %150, %149 : vector<4x32xf32>
    %cst_74 = arith.constant 5.000000e-01 : f32
    %152 = vector.broadcast %cst_74 : f32 to vector<4x32xf32>
    %153 = arith.addf %151, %152 : vector<4x32xf32>
    %154 = vector.extract_strided_slice %137 {offsets = [0, 64], sizes = [4, 32], strides = [1, 1]} : vector<4x128xf32> to vector<4x32xf32>
    %155 = math.tanh %154 : vector<4x32xf32>
    %156 = vector.extract_strided_slice %137 {offsets = [0, 96], sizes = [4, 32], strides = [1, 1]} : vector<4x128xf32> to vector<4x32xf32>
    %cst_75 = arith.constant 5.000000e-01 : f32
    %157 = vector.broadcast %cst_75 : f32 to vector<4x32xf32>
    %158 = arith.mulf %157, %156 : vector<4x32xf32>
    %159 = math.tanh %158 : vector<4x32xf32>
    %cst_76 = arith.constant 5.000000e-01 : f32
    %160 = vector.broadcast %cst_76 : f32 to vector<4x32xf32>
    %161 = arith.mulf %160, %159 : vector<4x32xf32>
    %cst_77 = arith.constant 5.000000e-01 : f32
    %162 = vector.broadcast %cst_77 : f32 to vector<4x32xf32>
    %163 = arith.addf %161, %162 : vector<4x32xf32>
    %c0_78 = arith.constant 0 : index
    %c0_79 = arith.constant 0 : index
    %164 = vector.load %arg7[%c0_78, %c0_79] : memref<4x32xf32, #tpu.memory_space<vmem>>, vector<4x32xf32>
    %165 = arith.mulf %153, %164 : vector<4x32xf32>
    %166 = arith.mulf %145, %155 : vector<4x32xf32>
    %167 = arith.addf %165, %166 : vector<4x32xf32>
    %168 = math.tanh %167 : vector<4x32xf32>
    %169 = arith.mulf %163, %168 : vector<4x32xf32>
    %c0_80 = arith.constant 0 : index
    %c0_81 = arith.constant 0 : index
    %170 = vector.load %arg7[%c0_80, %c0_81] : memref<4x32xf32, #tpu.memory_space<vmem>>, vector<4x32xf32>
    tpu.vector_store %arg7[%c0_80, %c0_81], %167 {strides = array<i32>} : memref<4x32xf32, #tpu.memory_space<vmem>>, vector<4x32xf32>,
    %c0_82 = arith.constant 0 : index
    %c0_83 = arith.constant 0 : index
    %171 = vector.load %arg6[%c0_82, %c0_83] : memref<4x32xf32, #tpu.memory_space<vmem>>, vector<4x32xf32>
    tpu.vector_store %arg6[%c0_82, %c0_83], %169 {strides = array<i32>} : memref<4x32xf32, #tpu.memory_space<vmem>>, vector<4x32xf32>,
    %172 = vector.extract_strided_slice %169 {offsets = [0, 0], sizes = [2, 32], strides = [1, 1]} : vector<4x32xf32> to vector<2x32xf32>
    %173 = arith.index_cast %c2_i32 : i32 to index
    %c0_84 = arith.constant 0 : index
    %c0_85 = arith.constant 0 : index
    %174 = vector.load %arg4[%173, %c0_84, %c0_85] : memref<8x2x32xf32, #tpu.memory_space<vmem>>, vector<1x2x32xf32>
    %175 = vector.shape_cast %174 : vector<1x2x32xf32> to vector<2x32xf32>
    %176 = vector.shape_cast %172 : vector<2x32xf32> to vector<1x2x32xf32>
    tpu.vector_store %arg4[%173, %c0_84, %c0_85], %176 {strides = array<i32>} : memref<8x2x32xf32, #tpu.memory_space<vmem>>, vector<1x2x32xf32>,
    %177 = vector.extract_strided_slice %169 {offsets = [2, 0], sizes = [2, 32], strides = [1, 1]} : vector<4x32xf32> to vector<2x32xf32>
    %c7_i32_86 = arith.constant 7 : i32
    %178 = arith.subi %c7_i32_86, %c2_i32 : i32
    %179 = arith.index_cast %178 : i32 to index
    %c0_87 = arith.constant 0 : index
    %c0_88 = arith.constant 0 : index
    %180 = vector.load %arg5[%179, %c0_87, %c0_88] : memref<8x2x32xf32, #tpu.memory_space<vmem>>, vector<1x2x32xf32>
    %181 = vector.shape_cast %180 : vector<1x2x32xf32> to vector<2x32xf32>
    %182 = vector.shape_cast %177 : vector<2x32xf32> to vector<1x2x32xf32>
    tpu.vector_store %arg5[%179, %c0_87, %c0_88], %182 {strides = array<i32>} : memref<8x2x32xf32, #tpu.memory_space<vmem>>, vector<1x2x32xf32>,
    %c3_i32 = arith.constant 3 : i32
    %c0_89 = arith.constant 0 : index
    %c0_90 = arith.constant 0 : index
    %183 = vector.load %arg6[%c0_89, %c0_90] : memref<4x32xf32, #tpu.memory_space<vmem>>, vector<4x32xf32>
    %c0_91 = arith.constant 0 : index
    %c0_92 = arith.constant 0 : index
    %184 = vector.load %arg3[%c0_91, %c0_92] : memref<32x256xf32, #tpu.memory_space<vmem>>, vector<32x256xf32>
    %cst_93 = arith.constant dense<0.000000e+00> : vector<4x256xf32>
    %185 = tpu.matmul %183, %184, %cst_93 {dimension_numbers = #tpu.dot_dimension_numbers<[1], [0], [0], [1], [0, 0, 1, 1], [], []>} : vector<4x32xf32>, vector<32x256xf32>, vector<4x256xf32> -> vector<4x256xf32>
    %186 = arith.index_cast %c3_i32 : i32 to index
    %c0_94 = arith.constant 0 : index
    %c0_95 = arith.constant 0 : index
    %187 = vector.load %arg1[%186, %c0_94, %c0_95] : memref<8x2x128xf32, #tpu.memory_space<vmem>>, vector<1x2x128xf32>
    %188 = vector.shape_cast %187 : vector<1x2x128xf32> to vector<2x128xf32>
    %189 = vector.extract_strided_slice %185 {offsets = [0, 0], sizes = [2, 128], strides = [1, 1]} : vector<4x256xf32> to vector<2x128xf32>
    %190 = arith.addf %188, %189 : vector<2x128xf32>
    %c7_i32_96 = arith.constant 7 : i32
    %191 = arith.subi %c7_i32_96, %c3_i32 : i32
    %192 = arith.index_cast %191 : i32 to index
    %c0_97 = arith.constant 0 : index
    %c0_98 = arith.constant 0 : index
    %193 = vector.load %arg2[%192, %c0_97, %c0_98] : memref<8x2x128xf32, #tpu.memory_space<vmem>>, vector<1x2x128xf32>
    %194 = vector.shape_cast %193 : vector<1x2x128xf32> to vector<2x128xf32>
    %195 = vector.extract_strided_slice %185 {offsets = [2, 128], sizes = [2, 128], strides = [1, 1]} : vector<4x256xf32> to vector<2x128xf32>
    %196 = arith.addf %194, %195 : vector<2x128xf32>
    %197 = tpu.concatenate %190, %196 in 0 : vector<2x128xf32>, vector<2x128xf32> -> vector<4x128xf32>
    %198 = vector.extract_strided_slice %197 {offsets = [0, 0], sizes = [4, 32], strides = [1, 1]} : vector<4x128xf32> to vector<4x32xf32>
    %cst_99 = arith.constant 5.000000e-01 : f32
    %199 = vector.broadcast %cst_99 : f32 to vector<4x32xf32>
    %200 = arith.mulf %199, %198 : vector<4x32xf32>
    %201 = math.tanh %200 : vector<4x32xf32>
    %cst_100 = arith.constant 5.000000e-01 : f32
    %202 = vector.broadcast %cst_100 : f32 to vector<4x32xf32>
    %203 = arith.mulf %202, %201 : vector<4x32xf32>
    %cst_101 = arith.constant 5.000000e-01 : f32
    %204 = vector.broadcast %cst_101 : f32 to vector<4x32xf32>
    %205 = arith.addf %203, %204 : vector<4x32xf32>
    %206 = vector.extract_strided_slice %197 {offsets = [0, 32], sizes = [4, 32], strides = [1, 1]} : vector<4x128xf32> to vector<4x32xf32>
    %cst_102 = arith.constant 5.000000e-01 : f32
    %207 = vector.broadcast %cst_102 : f32 to vector<4x32xf32>
    %208 = arith.mulf %207, %206 : vector<4x32xf32>
    %209 = math.tanh %208 : vector<4x32xf32>
    %cst_103 = arith.constant 5.000000e-01 : f32
    %210 = vector.broadcast %cst_103 : f32 to vector<4x32xf32>
    %211 = arith.mulf %210, %209 : vector<4x32xf32>
    %cst_104 = arith.constant 5.000000e-01 : f32
    %212 = vector.broadcast %cst_104 : f32 to vector<4x32xf32>
    %213 = arith.addf %211, %212 : vector<4x32xf32>
    %214 = vector.extract_strided_slice %197 {offsets = [0, 64], sizes = [4, 32], strides = [1, 1]} : vector<4x128xf32> to vector<4x32xf32>
    %215 = math.tanh %214 : vector<4x32xf32>
    %216 = vector.extract_strided_slice %197 {offsets = [0, 96], sizes = [4, 32], strides = [1, 1]} : vector<4x128xf32> to vector<4x32xf32>
    %cst_105 = arith.constant 5.000000e-01 : f32
    %217 = vector.broadcast %cst_105 : f32 to vector<4x32xf32>
    %218 = arith.mulf %217, %216 : vector<4x32xf32>
    %219 = math.tanh %218 : vector<4x32xf32>
    %cst_106 = arith.constant 5.000000e-01 : f32
    %220 = vector.broadcast %cst_106 : f32 to vector<4x32xf32>
    %221 = arith.mulf %220, %219 : vector<4x32xf32>
    %cst_107 = arith.constant 5.000000e-01 : f32
    %222 = vector.broadcast %cst_107 : f32 to vector<4x32xf32>
    %223 = arith.addf %221, %222 : vector<4x32xf32>
    %c0_108 = arith.constant 0 : index
    %c0_109 = arith.constant 0 : index
    %224 = vector.load %arg7[%c0_108, %c0_109] : memref<4x32xf32, #tpu.memory_space<vmem>>, vector<4x32xf32>
    %225 = arith.mulf %213, %224 : vector<4x32xf32>
    %226 = arith.mulf %205, %215 : vector<4x32xf32>
    %227 = arith.addf %225, %226 : vector<4x32xf32>
    %228 = math.tanh %227 : vector<4x32xf32>
    %229 = arith.mulf %223, %228 : vector<4x32xf32>
    %c0_110 = arith.constant 0 : index
    %c0_111 = arith.constant 0 : index
    %230 = vector.load %arg7[%c0_110, %c0_111] : memref<4x32xf32, #tpu.memory_space<vmem>>, vector<4x32xf32>
    tpu.vector_store %arg7[%c0_110, %c0_111], %227 {strides = array<i32>} : memref<4x32xf32, #tpu.memory_space<vmem>>, vector<4x32xf32>,
    %c0_112 = arith.constant 0 : index
    %c0_113 = arith.constant 0 : index
    %231 = vector.load %arg6[%c0_112, %c0_113] : memref<4x32xf32, #tpu.memory_space<vmem>>, vector<4x32xf32>
    tpu.vector_store %arg6[%c0_112, %c0_113], %229 {strides = array<i32>} : memref<4x32xf32, #tpu.memory_space<vmem>>, vector<4x32xf32>,
    %232 = vector.extract_strided_slice %229 {offsets = [0, 0], sizes = [2, 32], strides = [1, 1]} : vector<4x32xf32> to vector<2x32xf32>
    %233 = arith.index_cast %c3_i32 : i32 to index
    %c0_114 = arith.constant 0 : index
    %c0_115 = arith.constant 0 : index
    %234 = vector.load %arg4[%233, %c0_114, %c0_115] : memref<8x2x32xf32, #tpu.memory_space<vmem>>, vector<1x2x32xf32>
    %235 = vector.shape_cast %234 : vector<1x2x32xf32> to vector<2x32xf32>
    %236 = vector.shape_cast %232 : vector<2x32xf32> to vector<1x2x32xf32>
    tpu.vector_store %arg4[%233, %c0_114, %c0_115], %236 {strides = array<i32>} : memref<8x2x32xf32, #tpu.memory_space<vmem>>, vector<1x2x32xf32>,
    %237 = vector.extract_strided_slice %229 {offsets = [2, 0], sizes = [2, 32], strides = [1, 1]} : vector<4x32xf32> to vector<2x32xf32>
    %c7_i32_116 = arith.constant 7 : i32
    %238 = arith.subi %c7_i32_116, %c3_i32 : i32
    %239 = arith.index_cast %238 : i32 to index
    %c0_117 = arith.constant 0 : index
    %c0_118 = arith.constant 0 : index
    %240 = vector.load %arg5[%239, %c0_117, %c0_118] : memref<8x2x32xf32, #tpu.memory_space<vmem>>, vector<1x2x32xf32>
    %241 = vector.shape_cast %240 : vector<1x2x32xf32> to vector<2x32xf32>
    %242 = vector.shape_cast %237 : vector<2x32xf32> to vector<1x2x32xf32>
    tpu.vector_store %arg5[%239, %c0_117, %c0_118], %242 {strides = array<i32>} : memref<8x2x32xf32, #tpu.memory_space<vmem>>, vector<1x2x32xf32>,
    %c4_i32 = arith.constant 4 : i32
    %c0_119 = arith.constant 0 : index
    %c0_120 = arith.constant 0 : index
    %243 = vector.load %arg6[%c0_119, %c0_120] : memref<4x32xf32, #tpu.memory_space<vmem>>, vector<4x32xf32>
    %c0_121 = arith.constant 0 : index
    %c0_122 = arith.constant 0 : index
    %244 = vector.load %arg3[%c0_121, %c0_122] : memref<32x256xf32, #tpu.memory_space<vmem>>, vector<32x256xf32>
    %cst_123 = arith.constant dense<0.000000e+00> : vector<4x256xf32>
    %245 = tpu.matmul %243, %244, %cst_123 {dimension_numbers = #tpu.dot_dimension_numbers<[1], [0], [0], [1], [0, 0, 1, 1], [], []>} : vector<4x32xf32>, vector<32x256xf32>, vector<4x256xf32> -> vector<4x256xf32>
    %246 = arith.index_cast %c4_i32 : i32 to index
    %c0_124 = arith.constant 0 : index
    %c0_125 = arith.constant 0 : index
    %247 = vector.load %arg1[%246, %c0_124, %c0_125] : memref<8x2x128xf32, #tpu.memory_space<vmem>>, vector<1x2x128xf32>
    %248 = vector.shape_cast %247 : vector<1x2x128xf32> to vector<2x128xf32>
    %249 = vector.extract_strided_slice %245 {offsets = [0, 0], sizes = [2, 128], strides = [1, 1]} : vector<4x256xf32> to vector<2x128xf32>
    %250 = arith.addf %248, %249 : vector<2x128xf32>
    %c7_i32_126 = arith.constant 7 : i32
    %251 = arith.subi %c7_i32_126, %c4_i32 : i32
    %252 = arith.index_cast %251 : i32 to index
    %c0_127 = arith.constant 0 : index
    %c0_128 = arith.constant 0 : index
    %253 = vector.load %arg2[%252, %c0_127, %c0_128] : memref<8x2x128xf32, #tpu.memory_space<vmem>>, vector<1x2x128xf32>
    %254 = vector.shape_cast %253 : vector<1x2x128xf32> to vector<2x128xf32>
    %255 = vector.extract_strided_slice %245 {offsets = [2, 128], sizes = [2, 128], strides = [1, 1]} : vector<4x256xf32> to vector<2x128xf32>
    %256 = arith.addf %254, %255 : vector<2x128xf32>
    %257 = tpu.concatenate %250, %256 in 0 : vector<2x128xf32>, vector<2x128xf32> -> vector<4x128xf32>
    %258 = vector.extract_strided_slice %257 {offsets = [0, 0], sizes = [4, 32], strides = [1, 1]} : vector<4x128xf32> to vector<4x32xf32>
    %cst_129 = arith.constant 5.000000e-01 : f32
    %259 = vector.broadcast %cst_129 : f32 to vector<4x32xf32>
    %260 = arith.mulf %259, %258 : vector<4x32xf32>
    %261 = math.tanh %260 : vector<4x32xf32>
    %cst_130 = arith.constant 5.000000e-01 : f32
    %262 = vector.broadcast %cst_130 : f32 to vector<4x32xf32>
    %263 = arith.mulf %262, %261 : vector<4x32xf32>
    %cst_131 = arith.constant 5.000000e-01 : f32
    %264 = vector.broadcast %cst_131 : f32 to vector<4x32xf32>
    %265 = arith.addf %263, %264 : vector<4x32xf32>
    %266 = vector.extract_strided_slice %257 {offsets = [0, 32], sizes = [4, 32], strides = [1, 1]} : vector<4x128xf32> to vector<4x32xf32>
    %cst_132 = arith.constant 5.000000e-01 : f32
    %267 = vector.broadcast %cst_132 : f32 to vector<4x32xf32>
    %268 = arith.mulf %267, %266 : vector<4x32xf32>
    %269 = math.tanh %268 : vector<4x32xf32>
    %cst_133 = arith.constant 5.000000e-01 : f32
    %270 = vector.broadcast %cst_133 : f32 to vector<4x32xf32>
    %271 = arith.mulf %270, %269 : vector<4x32xf32>
    %cst_134 = arith.constant 5.000000e-01 : f32
    %272 = vector.broadcast %cst_134 : f32 to vector<4x32xf32>
    %273 = arith.addf %271, %272 : vector<4x32xf32>
    %274 = vector.extract_strided_slice %257 {offsets = [0, 64], sizes = [4, 32], strides = [1, 1]} : vector<4x128xf32> to vector<4x32xf32>
    %275 = math.tanh %274 : vector<4x32xf32>
    %276 = vector.extract_strided_slice %257 {offsets = [0, 96], sizes = [4, 32], strides = [1, 1]} : vector<4x128xf32> to vector<4x32xf32>
    %cst_135 = arith.constant 5.000000e-01 : f32
    %277 = vector.broadcast %cst_135 : f32 to vector<4x32xf32>
    %278 = arith.mulf %277, %276 : vector<4x32xf32>
    %279 = math.tanh %278 : vector<4x32xf32>
    %cst_136 = arith.constant 5.000000e-01 : f32
    %280 = vector.broadcast %cst_136 : f32 to vector<4x32xf32>
    %281 = arith.mulf %280, %279 : vector<4x32xf32>
    %cst_137 = arith.constant 5.000000e-01 : f32
    %282 = vector.broadcast %cst_137 : f32 to vector<4x32xf32>
    %283 = arith.addf %281, %282 : vector<4x32xf32>
    %c0_138 = arith.constant 0 : index
    %c0_139 = arith.constant 0 : index
    %284 = vector.load %arg7[%c0_138, %c0_139] : memref<4x32xf32, #tpu.memory_space<vmem>>, vector<4x32xf32>
    %285 = arith.mulf %273, %284 : vector<4x32xf32>
    %286 = arith.mulf %265, %275 : vector<4x32xf32>
    %287 = arith.addf %285, %286 : vector<4x32xf32>
    %288 = math.tanh %287 : vector<4x32xf32>
    %289 = arith.mulf %283, %288 : vector<4x32xf32>
    %c0_140 = arith.constant 0 : index
    %c0_141 = arith.constant 0 : index
    %290 = vector.load %arg7[%c0_140, %c0_141] : memref<4x32xf32, #tpu.memory_space<vmem>>, vector<4x32xf32>
    tpu.vector_store %arg7[%c0_140, %c0_141], %287 {strides = array<i32>} : memref<4x32xf32, #tpu.memory_space<vmem>>, vector<4x32xf32>,
    %c0_142 = arith.constant 0 : index
    %c0_143 = arith.constant 0 : index
    %291 = vector.load %arg6[%c0_142, %c0_143] : memref<4x32xf32, #tpu.memory_space<vmem>>, vector<4x32xf32>
    tpu.vector_store %arg6[%c0_142, %c0_143], %289 {strides = array<i32>} : memref<4x32xf32, #tpu.memory_space<vmem>>, vector<4x32xf32>,
    %292 = vector.extract_strided_slice %289 {offsets = [0, 0], sizes = [2, 32], strides = [1, 1]} : vector<4x32xf32> to vector<2x32xf32>
    %293 = arith.index_cast %c4_i32 : i32 to index
    %c0_144 = arith.constant 0 : index
    %c0_145 = arith.constant 0 : index
    %294 = vector.load %arg4[%293, %c0_144, %c0_145] : memref<8x2x32xf32, #tpu.memory_space<vmem>>, vector<1x2x32xf32>
    %295 = vector.shape_cast %294 : vector<1x2x32xf32> to vector<2x32xf32>
    %296 = vector.shape_cast %292 : vector<2x32xf32> to vector<1x2x32xf32>
    tpu.vector_store %arg4[%293, %c0_144, %c0_145], %296 {strides = array<i32>} : memref<8x2x32xf32, #tpu.memory_space<vmem>>, vector<1x2x32xf32>,
    %297 = vector.extract_strided_slice %289 {offsets = [2, 0], sizes = [2, 32], strides = [1, 1]} : vector<4x32xf32> to vector<2x32xf32>
    %c7_i32_146 = arith.constant 7 : i32
    %298 = arith.subi %c7_i32_146, %c4_i32 : i32
    %299 = arith.index_cast %298 : i32 to index
    %c0_147 = arith.constant 0 : index
    %c0_148 = arith.constant 0 : index
    %300 = vector.load %arg5[%299, %c0_147, %c0_148] : memref<8x2x32xf32, #tpu.memory_space<vmem>>, vector<1x2x32xf32>
    %301 = vector.shape_cast %300 : vector<1x2x32xf32> to vector<2x32xf32>
    %302 = vector.shape_cast %297 : vector<2x32xf32> to vector<1x2x32xf32>
    tpu.vector_store %arg5[%299, %c0_147, %c0_148], %302 {strides = array<i32>} : memref<8x2x32xf32, #tpu.memory_space<vmem>>, vector<1x2x32xf32>,
    %c5_i32 = arith.constant 5 : i32
    %c0_149 = arith.constant 0 : index
    %c0_150 = arith.constant 0 : index
    %303 = vector.load %arg6[%c0_149, %c0_150] : memref<4x32xf32, #tpu.memory_space<vmem>>, vector<4x32xf32>
    %c0_151 = arith.constant 0 : index
    %c0_152 = arith.constant 0 : index
    %304 = vector.load %arg3[%c0_151, %c0_152] : memref<32x256xf32, #tpu.memory_space<vmem>>, vector<32x256xf32>
    %cst_153 = arith.constant dense<0.000000e+00> : vector<4x256xf32>
    %305 = tpu.matmul %303, %304, %cst_153 {dimension_numbers = #tpu.dot_dimension_numbers<[1], [0], [0], [1], [0, 0, 1, 1], [], []>} : vector<4x32xf32>, vector<32x256xf32>, vector<4x256xf32> -> vector<4x256xf32>
    %306 = arith.index_cast %c5_i32 : i32 to index
    %c0_154 = arith.constant 0 : index
    %c0_155 = arith.constant 0 : index
    %307 = vector.load %arg1[%306, %c0_154, %c0_155] : memref<8x2x128xf32, #tpu.memory_space<vmem>>, vector<1x2x128xf32>
    %308 = vector.shape_cast %307 : vector<1x2x128xf32> to vector<2x128xf32>
    %309 = vector.extract_strided_slice %305 {offsets = [0, 0], sizes = [2, 128], strides = [1, 1]} : vector<4x256xf32> to vector<2x128xf32>
    %310 = arith.addf %308, %309 : vector<2x128xf32>
    %c7_i32_156 = arith.constant 7 : i32
    %311 = arith.subi %c7_i32_156, %c5_i32 : i32
    %312 = arith.index_cast %311 : i32 to index
    %c0_157 = arith.constant 0 : index
    %c0_158 = arith.constant 0 : index
    %313 = vector.load %arg2[%312, %c0_157, %c0_158] : memref<8x2x128xf32, #tpu.memory_space<vmem>>, vector<1x2x128xf32>
    %314 = vector.shape_cast %313 : vector<1x2x128xf32> to vector<2x128xf32>
    %315 = vector.extract_strided_slice %305 {offsets = [2, 128], sizes = [2, 128], strides = [1, 1]} : vector<4x256xf32> to vector<2x128xf32>
    %316 = arith.addf %314, %315 : vector<2x128xf32>
    %317 = tpu.concatenate %310, %316 in 0 : vector<2x128xf32>, vector<2x128xf32> -> vector<4x128xf32>
    %318 = vector.extract_strided_slice %317 {offsets = [0, 0], sizes = [4, 32], strides = [1, 1]} : vector<4x128xf32> to vector<4x32xf32>
    %cst_159 = arith.constant 5.000000e-01 : f32
    %319 = vector.broadcast %cst_159 : f32 to vector<4x32xf32>
    %320 = arith.mulf %319, %318 : vector<4x32xf32>
    %321 = math.tanh %320 : vector<4x32xf32>
    %cst_160 = arith.constant 5.000000e-01 : f32
    %322 = vector.broadcast %cst_160 : f32 to vector<4x32xf32>
    %323 = arith.mulf %322, %321 : vector<4x32xf32>
    %cst_161 = arith.constant 5.000000e-01 : f32
    %324 = vector.broadcast %cst_161 : f32 to vector<4x32xf32>
    %325 = arith.addf %323, %324 : vector<4x32xf32>
    %326 = vector.extract_strided_slice %317 {offsets = [0, 32], sizes = [4, 32], strides = [1, 1]} : vector<4x128xf32> to vector<4x32xf32>
    %cst_162 = arith.constant 5.000000e-01 : f32
    %327 = vector.broadcast %cst_162 : f32 to vector<4x32xf32>
    %328 = arith.mulf %327, %326 : vector<4x32xf32>
    %329 = math.tanh %328 : vector<4x32xf32>
    %cst_163 = arith.constant 5.000000e-01 : f32
    %330 = vector.broadcast %cst_163 : f32 to vector<4x32xf32>
    %331 = arith.mulf %330, %329 : vector<4x32xf32>
    %cst_164 = arith.constant 5.000000e-01 : f32
    %332 = vector.broadcast %cst_164 : f32 to vector<4x32xf32>
    %333 = arith.addf %331, %332 : vector<4x32xf32>
    %334 = vector.extract_strided_slice %317 {offsets = [0, 64], sizes = [4, 32], strides = [1, 1]} : vector<4x128xf32> to vector<4x32xf32>
    %335 = math.tanh %334 : vector<4x32xf32>
    %336 = vector.extract_strided_slice %317 {offsets = [0, 96], sizes = [4, 32], strides = [1, 1]} : vector<4x128xf32> to vector<4x32xf32>
    %cst_165 = arith.constant 5.000000e-01 : f32
    %337 = vector.broadcast %cst_165 : f32 to vector<4x32xf32>
    %338 = arith.mulf %337, %336 : vector<4x32xf32>
    %339 = math.tanh %338 : vector<4x32xf32>
    %cst_166 = arith.constant 5.000000e-01 : f32
    %340 = vector.broadcast %cst_166 : f32 to vector<4x32xf32>
    %341 = arith.mulf %340, %339 : vector<4x32xf32>
    %cst_167 = arith.constant 5.000000e-01 : f32
    %342 = vector.broadcast %cst_167 : f32 to vector<4x32xf32>
    %343 = arith.addf %341, %342 : vector<4x32xf32>
    %c0_168 = arith.constant 0 : index
    %c0_169 = arith.constant 0 : index
    %344 = vector.load %arg7[%c0_168, %c0_169] : memref<4x32xf32, #tpu.memory_space<vmem>>, vector<4x32xf32>
    %345 = arith.mulf %333, %344 : vector<4x32xf32>
    %346 = arith.mulf %325, %335 : vector<4x32xf32>
    %347 = arith.addf %345, %346 : vector<4x32xf32>
    %348 = math.tanh %347 : vector<4x32xf32>
    %349 = arith.mulf %343, %348 : vector<4x32xf32>
    %c0_170 = arith.constant 0 : index
    %c0_171 = arith.constant 0 : index
    %350 = vector.load %arg7[%c0_170, %c0_171] : memref<4x32xf32, #tpu.memory_space<vmem>>, vector<4x32xf32>
    tpu.vector_store %arg7[%c0_170, %c0_171], %347 {strides = array<i32>} : memref<4x32xf32, #tpu.memory_space<vmem>>, vector<4x32xf32>,
    %c0_172 = arith.constant 0 : index
    %c0_173 = arith.constant 0 : index
    %351 = vector.load %arg6[%c0_172, %c0_173] : memref<4x32xf32, #tpu.memory_space<vmem>>, vector<4x32xf32>
    tpu.vector_store %arg6[%c0_172, %c0_173], %349 {strides = array<i32>} : memref<4x32xf32, #tpu.memory_space<vmem>>, vector<4x32xf32>,
    %352 = vector.extract_strided_slice %349 {offsets = [0, 0], sizes = [2, 32], strides = [1, 1]} : vector<4x32xf32> to vector<2x32xf32>
    %353 = arith.index_cast %c5_i32 : i32 to index
    %c0_174 = arith.constant 0 : index
    %c0_175 = arith.constant 0 : index
    %354 = vector.load %arg4[%353, %c0_174, %c0_175] : memref<8x2x32xf32, #tpu.memory_space<vmem>>, vector<1x2x32xf32>
    %355 = vector.shape_cast %354 : vector<1x2x32xf32> to vector<2x32xf32>
    %356 = vector.shape_cast %352 : vector<2x32xf32> to vector<1x2x32xf32>
    tpu.vector_store %arg4[%353, %c0_174, %c0_175], %356 {strides = array<i32>} : memref<8x2x32xf32, #tpu.memory_space<vmem>>, vector<1x2x32xf32>,
    %357 = vector.extract_strided_slice %349 {offsets = [2, 0], sizes = [2, 32], strides = [1, 1]} : vector<4x32xf32> to vector<2x32xf32>
    %c7_i32_176 = arith.constant 7 : i32
    %358 = arith.subi %c7_i32_176, %c5_i32 : i32
    %359 = arith.index_cast %358 : i32 to index
    %c0_177 = arith.constant 0 : index
    %c0_178 = arith.constant 0 : index
    %360 = vector.load %arg5[%359, %c0_177, %c0_178] : memref<8x2x32xf32, #tpu.memory_space<vmem>>, vector<1x2x32xf32>
    %361 = vector.shape_cast %360 : vector<1x2x32xf32> to vector<2x32xf32>
    %362 = vector.shape_cast %357 : vector<2x32xf32> to vector<1x2x32xf32>
    tpu.vector_store %arg5[%359, %c0_177, %c0_178], %362 {strides = array<i32>} : memref<8x2x32xf32, #tpu.memory_space<vmem>>, vector<1x2x32xf32>,
    %c6_i32 = arith.constant 6 : i32
    %c0_179 = arith.constant 0 : index
    %c0_180 = arith.constant 0 : index
    %363 = vector.load %arg6[%c0_179, %c0_180] : memref<4x32xf32, #tpu.memory_space<vmem>>, vector<4x32xf32>
    %c0_181 = arith.constant 0 : index
    %c0_182 = arith.constant 0 : index
    %364 = vector.load %arg3[%c0_181, %c0_182] : memref<32x256xf32, #tpu.memory_space<vmem>>, vector<32x256xf32>
    %cst_183 = arith.constant dense<0.000000e+00> : vector<4x256xf32>
    %365 = tpu.matmul %363, %364, %cst_183 {dimension_numbers = #tpu.dot_dimension_numbers<[1], [0], [0], [1], [0, 0, 1, 1], [], []>} : vector<4x32xf32>, vector<32x256xf32>, vector<4x256xf32> -> vector<4x256xf32>
    %366 = arith.index_cast %c6_i32 : i32 to index
    %c0_184 = arith.constant 0 : index
    %c0_185 = arith.constant 0 : index
    %367 = vector.load %arg1[%366, %c0_184, %c0_185] : memref<8x2x128xf32, #tpu.memory_space<vmem>>, vector<1x2x128xf32>
    %368 = vector.shape_cast %367 : vector<1x2x128xf32> to vector<2x128xf32>
    %369 = vector.extract_strided_slice %365 {offsets = [0, 0], sizes = [2, 128], strides = [1, 1]} : vector<4x256xf32> to vector<2x128xf32>
    %370 = arith.addf %368, %369 : vector<2x128xf32>
    %c7_i32_186 = arith.constant 7 : i32
    %371 = arith.subi %c7_i32_186, %c6_i32 : i32
    %372 = arith.index_cast %371 : i32 to index
    %c0_187 = arith.constant 0 : index
    %c0_188 = arith.constant 0 : index
    %373 = vector.load %arg2[%372, %c0_187, %c0_188] : memref<8x2x128xf32, #tpu.memory_space<vmem>>, vector<1x2x128xf32>
    %374 = vector.shape_cast %373 : vector<1x2x128xf32> to vector<2x128xf32>
    %375 = vector.extract_strided_slice %365 {offsets = [2, 128], sizes = [2, 128], strides = [1, 1]} : vector<4x256xf32> to vector<2x128xf32>
    %376 = arith.addf %374, %375 : vector<2x128xf32>
    %377 = tpu.concatenate %370, %376 in 0 : vector<2x128xf32>, vector<2x128xf32> -> vector<4x128xf32>
    %378 = vector.extract_strided_slice %377 {offsets = [0, 0], sizes = [4, 32], strides = [1, 1]} : vector<4x128xf32> to vector<4x32xf32>
    %cst_189 = arith.constant 5.000000e-01 : f32
    %379 = vector.broadcast %cst_189 : f32 to vector<4x32xf32>
    %380 = arith.mulf %379, %378 : vector<4x32xf32>
    %381 = math.tanh %380 : vector<4x32xf32>
    %cst_190 = arith.constant 5.000000e-01 : f32
    %382 = vector.broadcast %cst_190 : f32 to vector<4x32xf32>
    %383 = arith.mulf %382, %381 : vector<4x32xf32>
    %cst_191 = arith.constant 5.000000e-01 : f32
    %384 = vector.broadcast %cst_191 : f32 to vector<4x32xf32>
    %385 = arith.addf %383, %384 : vector<4x32xf32>
    %386 = vector.extract_strided_slice %377 {offsets = [0, 32], sizes = [4, 32], strides = [1, 1]} : vector<4x128xf32> to vector<4x32xf32>
    %cst_192 = arith.constant 5.000000e-01 : f32
    %387 = vector.broadcast %cst_192 : f32 to vector<4x32xf32>
    %388 = arith.mulf %387, %386 : vector<4x32xf32>
    %389 = math.tanh %388 : vector<4x32xf32>
    %cst_193 = arith.constant 5.000000e-01 : f32
    %390 = vector.broadcast %cst_193 : f32 to vector<4x32xf32>
    %391 = arith.mulf %390, %389 : vector<4x32xf32>
    %cst_194 = arith.constant 5.000000e-01 : f32
    %392 = vector.broadcast %cst_194 : f32 to vector<4x32xf32>
    %393 = arith.addf %391, %392 : vector<4x32xf32>
    %394 = vector.extract_strided_slice %377 {offsets = [0, 64], sizes = [4, 32], strides = [1, 1]} : vector<4x128xf32> to vector<4x32xf32>
    %395 = math.tanh %394 : vector<4x32xf32>
    %396 = vector.extract_strided_slice %377 {offsets = [0, 96], sizes = [4, 32], strides = [1, 1]} : vector<4x128xf32> to vector<4x32xf32>
    %cst_195 = arith.constant 5.000000e-01 : f32
    %397 = vector.broadcast %cst_195 : f32 to vector<4x32xf32>
    %398 = arith.mulf %397, %396 : vector<4x32xf32>
    %399 = math.tanh %398 : vector<4x32xf32>
    %cst_196 = arith.constant 5.000000e-01 : f32
    %400 = vector.broadcast %cst_196 : f32 to vector<4x32xf32>
    %401 = arith.mulf %400, %399 : vector<4x32xf32>
    %cst_197 = arith.constant 5.000000e-01 : f32
    %402 = vector.broadcast %cst_197 : f32 to vector<4x32xf32>
    %403 = arith.addf %401, %402 : vector<4x32xf32>
    %c0_198 = arith.constant 0 : index
    %c0_199 = arith.constant 0 : index
    %404 = vector.load %arg7[%c0_198, %c0_199] : memref<4x32xf32, #tpu.memory_space<vmem>>, vector<4x32xf32>
    %405 = arith.mulf %393, %404 : vector<4x32xf32>
    %406 = arith.mulf %385, %395 : vector<4x32xf32>
    %407 = arith.addf %405, %406 : vector<4x32xf32>
    %408 = math.tanh %407 : vector<4x32xf32>
    %409 = arith.mulf %403, %408 : vector<4x32xf32>
    %c0_200 = arith.constant 0 : index
    %c0_201 = arith.constant 0 : index
    %410 = vector.load %arg7[%c0_200, %c0_201] : memref<4x32xf32, #tpu.memory_space<vmem>>, vector<4x32xf32>
    tpu.vector_store %arg7[%c0_200, %c0_201], %407 {strides = array<i32>} : memref<4x32xf32, #tpu.memory_space<vmem>>, vector<4x32xf32>,
    %c0_202 = arith.constant 0 : index
    %c0_203 = arith.constant 0 : index
    %411 = vector.load %arg6[%c0_202, %c0_203] : memref<4x32xf32, #tpu.memory_space<vmem>>, vector<4x32xf32>
    tpu.vector_store %arg6[%c0_202, %c0_203], %409 {strides = array<i32>} : memref<4x32xf32, #tpu.memory_space<vmem>>, vector<4x32xf32>,
    %412 = vector.extract_strided_slice %409 {offsets = [0, 0], sizes = [2, 32], strides = [1, 1]} : vector<4x32xf32> to vector<2x32xf32>
    %413 = arith.index_cast %c6_i32 : i32 to index
    %c0_204 = arith.constant 0 : index
    %c0_205 = arith.constant 0 : index
    %414 = vector.load %arg4[%413, %c0_204, %c0_205] : memref<8x2x32xf32, #tpu.memory_space<vmem>>, vector<1x2x32xf32>
    %415 = vector.shape_cast %414 : vector<1x2x32xf32> to vector<2x32xf32>
    %416 = vector.shape_cast %412 : vector<2x32xf32> to vector<1x2x32xf32>
    tpu.vector_store %arg4[%413, %c0_204, %c0_205], %416 {strides = array<i32>} : memref<8x2x32xf32, #tpu.memory_space<vmem>>, vector<1x2x32xf32>,
    %417 = vector.extract_strided_slice %409 {offsets = [2, 0], sizes = [2, 32], strides = [1, 1]} : vector<4x32xf32> to vector<2x32xf32>
    %c7_i32_206 = arith.constant 7 : i32
    %418 = arith.subi %c7_i32_206, %c6_i32 : i32
    %419 = arith.index_cast %418 : i32 to index
    %c0_207 = arith.constant 0 : index
    %c0_208 = arith.constant 0 : index
    %420 = vector.load %arg5[%419, %c0_207, %c0_208] : memref<8x2x32xf32, #tpu.memory_space<vmem>>, vector<1x2x32xf32>
    %421 = vector.shape_cast %420 : vector<1x2x32xf32> to vector<2x32xf32>
    %422 = vector.shape_cast %417 : vector<2x32xf32> to vector<1x2x32xf32>
    tpu.vector_store %arg5[%419, %c0_207, %c0_208], %422 {strides = array<i32>} : memref<8x2x32xf32, #tpu.memory_space<vmem>>, vector<1x2x32xf32>,
    %c7_i32_209 = arith.constant 7 : i32
    %c0_210 = arith.constant 0 : index
    %c0_211 = arith.constant 0 : index
    %423 = vector.load %arg6[%c0_210, %c0_211] : memref<4x32xf32, #tpu.memory_space<vmem>>, vector<4x32xf32>
    %c0_212 = arith.constant 0 : index
    %c0_213 = arith.constant 0 : index
    %424 = vector.load %arg3[%c0_212, %c0_213] : memref<32x256xf32, #tpu.memory_space<vmem>>, vector<32x256xf32>
    %cst_214 = arith.constant dense<0.000000e+00> : vector<4x256xf32>
    %425 = tpu.matmul %423, %424, %cst_214 {dimension_numbers = #tpu.dot_dimension_numbers<[1], [0], [0], [1], [0, 0, 1, 1], [], []>} : vector<4x32xf32>, vector<32x256xf32>, vector<4x256xf32> -> vector<4x256xf32>
    %426 = arith.index_cast %c7_i32_209 : i32 to index
    %c0_215 = arith.constant 0 : index
    %c0_216 = arith.constant 0 : index
    %427 = vector.load %arg1[%426, %c0_215, %c0_216] : memref<8x2x128xf32, #tpu.memory_space<vmem>>, vector<1x2x128xf32>
    %428 = vector.shape_cast %427 : vector<1x2x128xf32> to vector<2x128xf32>
    %429 = vector.extract_strided_slice %425 {offsets = [0, 0], sizes = [2, 128], strides = [1, 1]} : vector<4x256xf32> to vector<2x128xf32>
    %430 = arith.addf %428, %429 : vector<2x128xf32>
    %c7_i32_217 = arith.constant 7 : i32
    %431 = arith.subi %c7_i32_217, %c7_i32_209 : i32
    %432 = arith.index_cast %431 : i32 to index
    %c0_218 = arith.constant 0 : index
    %c0_219 = arith.constant 0 : index
    %433 = vector.load %arg2[%432, %c0_218, %c0_219] : memref<8x2x128xf32, #tpu.memory_space<vmem>>, vector<1x2x128xf32>
    %434 = vector.shape_cast %433 : vector<1x2x128xf32> to vector<2x128xf32>
    %435 = vector.extract_strided_slice %425 {offsets = [2, 128], sizes = [2, 128], strides = [1, 1]} : vector<4x256xf32> to vector<2x128xf32>
    %436 = arith.addf %434, %435 : vector<2x128xf32>
    %437 = tpu.concatenate %430, %436 in 0 : vector<2x128xf32>, vector<2x128xf32> -> vector<4x128xf32>
    %438 = vector.extract_strided_slice %437 {offsets = [0, 0], sizes = [4, 32], strides = [1, 1]} : vector<4x128xf32> to vector<4x32xf32>
    %cst_220 = arith.constant 5.000000e-01 : f32
    %439 = vector.broadcast %cst_220 : f32 to vector<4x32xf32>
    %440 = arith.mulf %439, %438 : vector<4x32xf32>
    %441 = math.tanh %440 : vector<4x32xf32>
    %cst_221 = arith.constant 5.000000e-01 : f32
    %442 = vector.broadcast %cst_221 : f32 to vector<4x32xf32>
    %443 = arith.mulf %442, %441 : vector<4x32xf32>
    %cst_222 = arith.constant 5.000000e-01 : f32
    %444 = vector.broadcast %cst_222 : f32 to vector<4x32xf32>
    %445 = arith.addf %443, %444 : vector<4x32xf32>
    %446 = vector.extract_strided_slice %437 {offsets = [0, 32], sizes = [4, 32], strides = [1, 1]} : vector<4x128xf32> to vector<4x32xf32>
    %cst_223 = arith.constant 5.000000e-01 : f32
    %447 = vector.broadcast %cst_223 : f32 to vector<4x32xf32>
    %448 = arith.mulf %447, %446 : vector<4x32xf32>
    %449 = math.tanh %448 : vector<4x32xf32>
    %cst_224 = arith.constant 5.000000e-01 : f32
    %450 = vector.broadcast %cst_224 : f32 to vector<4x32xf32>
    %451 = arith.mulf %450, %449 : vector<4x32xf32>
    %cst_225 = arith.constant 5.000000e-01 : f32
    %452 = vector.broadcast %cst_225 : f32 to vector<4x32xf32>
    %453 = arith.addf %451, %452 : vector<4x32xf32>
    %454 = vector.extract_strided_slice %437 {offsets = [0, 64], sizes = [4, 32], strides = [1, 1]} : vector<4x128xf32> to vector<4x32xf32>
    %455 = math.tanh %454 : vector<4x32xf32>
    %456 = vector.extract_strided_slice %437 {offsets = [0, 96], sizes = [4, 32], strides = [1, 1]} : vector<4x128xf32> to vector<4x32xf32>
    %cst_226 = arith.constant 5.000000e-01 : f32
    %457 = vector.broadcast %cst_226 : f32 to vector<4x32xf32>
    %458 = arith.mulf %457, %456 : vector<4x32xf32>
    %459 = math.tanh %458 : vector<4x32xf32>
    %cst_227 = arith.constant 5.000000e-01 : f32
    %460 = vector.broadcast %cst_227 : f32 to vector<4x32xf32>
    %461 = arith.mulf %460, %459 : vector<4x32xf32>
    %cst_228 = arith.constant 5.000000e-01 : f32
    %462 = vector.broadcast %cst_228 : f32 to vector<4x32xf32>
    %463 = arith.addf %461, %462 : vector<4x32xf32>
    %c0_229 = arith.constant 0 : index
    %c0_230 = arith.constant 0 : index
    %464 = vector.load %arg7[%c0_229, %c0_230] : memref<4x32xf32, #tpu.memory_space<vmem>>, vector<4x32xf32>
    %465 = arith.mulf %453, %464 : vector<4x32xf32>
    %466 = arith.mulf %445, %455 : vector<4x32xf32>
    %467 = arith.addf %465, %466 : vector<4x32xf32>
    %468 = math.tanh %467 : vector<4x32xf32>
    %469 = arith.mulf %463, %468 : vector<4x32xf32>
    %c0_231 = arith.constant 0 : index
    %c0_232 = arith.constant 0 : index
    %470 = vector.load %arg7[%c0_231, %c0_232] : memref<4x32xf32, #tpu.memory_space<vmem>>, vector<4x32xf32>
    tpu.vector_store %arg7[%c0_231, %c0_232], %467 {strides = array<i32>} : memref<4x32xf32, #tpu.memory_space<vmem>>, vector<4x32xf32>,
    %c0_233 = arith.constant 0 : index
    %c0_234 = arith.constant 0 : index
    %471 = vector.load %arg6[%c0_233, %c0_234] : memref<4x32xf32, #tpu.memory_space<vmem>>, vector<4x32xf32>
    tpu.vector_store %arg6[%c0_233, %c0_234], %469 {strides = array<i32>} : memref<4x32xf32, #tpu.memory_space<vmem>>, vector<4x32xf32>,
    %472 = vector.extract_strided_slice %469 {offsets = [0, 0], sizes = [2, 32], strides = [1, 1]} : vector<4x32xf32> to vector<2x32xf32>
    %473 = arith.index_cast %c7_i32_209 : i32 to index
    %c0_235 = arith.constant 0 : index
    %c0_236 = arith.constant 0 : index
    %474 = vector.load %arg4[%473, %c0_235, %c0_236] : memref<8x2x32xf32, #tpu.memory_space<vmem>>, vector<1x2x32xf32>
    %475 = vector.shape_cast %474 : vector<1x2x32xf32> to vector<2x32xf32>
    %476 = vector.shape_cast %472 : vector<2x32xf32> to vector<1x2x32xf32>
    tpu.vector_store %arg4[%473, %c0_235, %c0_236], %476 {strides = array<i32>} : memref<8x2x32xf32, #tpu.memory_space<vmem>>, vector<1x2x32xf32>,
    %477 = vector.extract_strided_slice %469 {offsets = [2, 0], sizes = [2, 32], strides = [1, 1]} : vector<4x32xf32> to vector<2x32xf32>
    %c7_i32_237 = arith.constant 7 : i32
    %478 = arith.subi %c7_i32_237, %c7_i32_209 : i32
    %479 = arith.index_cast %478 : i32 to index
    %c0_238 = arith.constant 0 : index
    %c0_239 = arith.constant 0 : index
    %480 = vector.load %arg5[%479, %c0_238, %c0_239] : memref<8x2x32xf32, #tpu.memory_space<vmem>>, vector<1x2x32xf32>
    %481 = vector.shape_cast %480 : vector<1x2x32xf32> to vector<2x32xf32>
    %482 = vector.shape_cast %477 : vector<2x32xf32> to vector<1x2x32xf32>
    tpu.vector_store %arg5[%479, %c0_238, %c0_239], %482 {strides = array<i32>} : memref<8x2x32xf32, #tpu.memory_space<vmem>>, vector<1x2x32xf32>,
    %c8_i32 = arith.constant 8 : i32
    return
  }
  func.func @transform_0(%arg0: i32) -> (i32, i32, i32) {
    %c0_i32 = arith.constant 0 : i32
    %c0_i32_0 = arith.constant 0 : i32
    %c0_i32_1 = arith.constant 0 : i32
    return %arg0, %c0_i32, %c0_i32_0 : i32, i32, i32
  }
  func.func @transform_1(%arg0: i32) -> (i32, i32, i32) {
    %c0_i32 = arith.constant 0 : i32
    %0 = arith.subi %c0_i32, %arg0 : i32
    %c0_i32_0 = arith.constant 0 : i32
    %c1_i32 = arith.constant 1 : i32
    %c0_i32_1 = arith.constant 0 : i32
    return %0, %c0_i32_0, %c1_i32 : i32, i32, i32
  }
  func.func @transform_2(%arg0: i32) -> (i32, i32) {
    %c0_i32 = arith.constant 0 : i32
    %c0_i32_0 = arith.constant 0 : i32
    %c0_i32_1 = arith.constant 0 : i32
    return %c0_i32, %c0_i32_0 : i32, i32
  }
  func.func @transform_3(%arg0: i32) -> (i32, i32, i32) {
    %c0_i32 = arith.constant 0 : i32
    %c0_i32_0 = arith.constant 0 : i32
    %c0_i32_1 = arith.constant 0 : i32
    return %arg0, %c0_i32, %c0_i32_0 : i32, i32, i32
  }
  func.func @transform_4(%arg0: i32) -> (i32, i32, i32) {
    %c0_i32 = arith.constant 0 : i32
    %0 = arith.subi %c0_i32, %arg0 : i32
    %c0_i32_0 = arith.constant 0 : i32
    %c0_i32_1 = arith.constant 0 : i32
    %c0_i32_2 = arith.constant 0 : i32
    return %0, %c0_i32_0, %c0_i32_1 : i32, i32, i32
  }
}

module attributes {stable_mosaic.version = 11 : i64} {
  func.func @kernel(%arg0: i32, %arg1: i32, %arg2: memref<16x32xf32, #tpu.memory_space<vmem>>, %arg3: memref<16x32xf32, #tpu.memory_space<vmem>>, %arg4: memref<32x128xf32, #tpu.memory_space<vmem>>, %arg5: memref<32x128xf32, #tpu.memory_space<vmem>>, %arg6: memref<1x128xf32, #tpu.memory_space<vmem>>, %arg7: memref<16x128xf32, #tpu.memory_space<vmem>>) attributes {dimension_semantics = [#tpu.dimension_semantics<parallel>, #tpu.dimension_semantics<parallel>], iteration_bounds = array<i64: 1, 1>, scalar_prefetch = 0 : i64, scratch_operands = 0 : i64, tpu.core_type = #tpu.core_type<tc>, window_params = [{transform_indices = @transform_0, window_bounds = array<i64: 16, 32>}, {transform_indices = @transform_1, window_bounds = array<i64: 16, 32>}, {transform_indices = @transform_2, window_bounds = array<i64: 32, 128>}, {transform_indices = @transform_3, window_bounds = array<i64: 32, 128>}, {transform_indices = @transform_4, window_bounds = array<i64: 1, 128>}, {transform_indices = @transform_5, window_bounds = array<i64: 16, 128>}]} {
    %c0 = arith.constant 0 : index
    %c0_0 = arith.constant 0 : index
    %0 = vector.load %arg2[%c0, %c0_0] : memref<16x32xf32, #tpu.memory_space<vmem>>, vector<16x32xf32>
    %c0_1 = arith.constant 0 : index
    %c0_2 = arith.constant 0 : index
    %1 = vector.load %arg4[%c0_1, %c0_2] : memref<32x128xf32, #tpu.memory_space<vmem>>, vector<32x128xf32>
    %cst = arith.constant dense<0.000000e+00> : vector<16x128xf32>
    %2 = tpu.matmul %0, %1, %cst {dimension_numbers = #tpu.dot_dimension_numbers<[1], [0], [0], [1], [0, 0, 1, 1], [], []>} : vector<16x32xf32>, vector<32x128xf32>, vector<16x128xf32> -> vector<16x128xf32>
    %c0_3 = arith.constant 0 : index
    %c0_4 = arith.constant 0 : index
    %3 = vector.load %arg3[%c0_3, %c0_4] : memref<16x32xf32, #tpu.memory_space<vmem>>, vector<16x32xf32>
    %c0_5 = arith.constant 0 : index
    %c0_6 = arith.constant 0 : index
    %4 = vector.load %arg5[%c0_5, %c0_6] : memref<32x128xf32, #tpu.memory_space<vmem>>, vector<32x128xf32>
    %cst_7 = arith.constant dense<0.000000e+00> : vector<16x128xf32>
    %5 = tpu.matmul %3, %4, %cst_7 {dimension_numbers = #tpu.dot_dimension_numbers<[1], [0], [0], [1], [0, 0, 1, 1], [], []>} : vector<16x32xf32>, vector<32x128xf32>, vector<16x128xf32> -> vector<16x128xf32>
    %6 = arith.addf %2, %5 : vector<16x128xf32>
    %c0_8 = arith.constant 0 : index
    %c0_9 = arith.constant 0 : index
    %7 = vector.load %arg6[%c0_8, %c0_9] : memref<1x128xf32, #tpu.memory_space<vmem>>, vector<1x128xf32>
    %8 = vector.broadcast %7 : vector<1x128xf32> to vector<16x128xf32>
    %9 = arith.addf %6, %8 : vector<16x128xf32>
    %c0_10 = arith.constant 0 : index
    %c0_11 = arith.constant 0 : index
    %10 = vector.load %arg7[%c0_10, %c0_11] : memref<16x128xf32, #tpu.memory_space<vmem>>, vector<16x128xf32>
    tpu.vector_store %arg7[%c0_10, %c0_11], %9 {strides = array<i32>} : memref<16x128xf32, #tpu.memory_space<vmem>>, vector<16x128xf32>,
    return
  }
  func.func @transform_0(%arg0: i32, %arg1: i32) -> (i32, i32) {
    %c0_i32 = arith.constant 0 : i32
    %c0_i32_0 = arith.constant 0 : i32
    return %arg0, %c0_i32 : i32, i32
  }
  func.func @transform_1(%arg0: i32, %arg1: i32) -> (i32, i32) {
    %c0_i32 = arith.constant 0 : i32
    %c0_i32_0 = arith.constant 0 : i32
    return %arg0, %c0_i32 : i32, i32
  }
  func.func @transform_2(%arg0: i32, %arg1: i32) -> (i32, i32) {
    %c0_i32 = arith.constant 0 : i32
    %c0_i32_0 = arith.constant 0 : i32
    return %c0_i32, %arg1 : i32, i32
  }
  func.func @transform_3(%arg0: i32, %arg1: i32) -> (i32, i32) {
    %c0_i32 = arith.constant 0 : i32
    %c0_i32_0 = arith.constant 0 : i32
    return %c0_i32, %arg1 : i32, i32
  }
  func.func @transform_4(%arg0: i32, %arg1: i32) -> (i32, i32) {
    %c0_i32 = arith.constant 0 : i32
    %c0_i32_0 = arith.constant 0 : i32
    return %c0_i32, %arg1 : i32, i32
  }
  func.func @transform_5(%arg0: i32, %arg1: i32) -> (i32, i32) {
    %c0_i32 = arith.constant 0 : i32
    return %arg0, %arg1 : i32, i32
  }
}

</mosaic_0001>

<bundles_post_ra>
// kernel: blstm_conversion_forward.7
= control target key start
LH: loop header
LB: loop body
LE: loop exit
PB: predicated region body
PF: predicated region fallthrough
CT: control target
= control target key end

     0   :  { %v256_v3 = vmov 0.0   ;;  %vm40_vm0 = vcmask 261120   ;;  %v209_v29 = vlaneseq  ;;  %s362_s3 = inlined_call_operand.vmem [shape: f32[32,256], index: 3, kind: input, shape index: {}]   ;;  %s363_s2 = inlined_call_operand.vmem [shape: f32[32,256], index: 2, kind: input, shape index: {}]   ;;  %s364_s1 = inlined_call_operand.vmem [shape: f32[16,32], index: 1, kind: input, shape index: {}]   ;;  %s365_s0 = inlined_call_operand.vmem [shape: f32[16,32], index: 0, kind: input, shape index: {}]   ;;  %s366_s4 = inlined_call_operand.vmem [shape: f32[1,256], index: 4, kind: input, shape index: {}]   ;;  %s367_s5 = inlined_call_operand.vmem [shape: f32[16,256], index: 5, kind: output, shape index: {}]  }
   0x1   :  { %v33_v0 = vld [vmem:[%s362_s3 + $0x8] sm:$0xff]  ;;  %v35_v1 = vld [vmem:[%s362_s3 + $0x18] sm:$0xff]  ;;  %111 = vmatprep.mubr.f32.mxu1 %v256_v3  ;;  %194 = vmatprep.mubr.f32.mxu0 %v256_v3  ;;  %v32_v6 = vld [vmem:[%s362_s3] sm:$0xff] }
   0x2   :  { %v23_v2 = vld [vmem:[%s363_s2 + $0x8] sm:$0xff]  ;;  %v235_v4 = vpack.c.bf16 %v35_v1, %v33_v0  ;;  %v25_v5 = vld [vmem:[%s363_s2 + $0x18] sm:$0xff]  ;;  %v34_v7 = vld [vmem:[%s362_s3 + $0x10] sm:$0xff]  ;;  %v210_v30 = vshrl.u32 %v209_v29, 7 }
   0x3   :  { %v243_v8 = vpack.c.bf16 %v25_v5, %v23_v2  ;;  %v237_v9 = vpack.c.bf16 %v34_v7, %v32_v6  ;;  %v22_v10 = vld [vmem:[%s363_s2] sm:$0xff]  ;;  %v24_v11 = vld [vmem:[%s363_s2 + $0x10] sm:$0xff]  ;;  %v37_v12 = vld [vmem:[%s362_s3 + $0x28] sm:$0xff] }
   0x4   :  { %236 = vmatprep.subr.bf16.mxu1 %v235_v4  ;;  %v245_v13 = vpack.c.bf16 %v24_v11, %v22_v10  ;;  %v39_v14 = vld [vmem:[%s362_s3 + $0x38] sm:$0xff]  ;;  %v27_v15 = vld [vmem:[%s363_s2 + $0x28] sm:$0xff]  ;;  %v36_v19 = vld [vmem:[%s362_s3 + $0x20] sm:$0xff]  ;;  %v211_v31 = vsub.s32 0, %v210_v30  ;;  %v215_v33 = vsub.s32 1, %v210_v30 }
   0x5   :  { %v29_v16 = vld [vmem:[%s363_s2 + $0x38] sm:$0xff]  ;;  %244 = vmatprep.subr.bf16.mxu0 %v243_v8  ;;  %238 = vmatpush1.bf16.msra.mxu1 %v237_v9  ;;  %v239_v17 = vpack.c.bf16 %v39_v14, %v37_v12  ;;  %v38_v20 = vld [vmem:[%s362_s3 + $0x30] sm:$0xff]  ;;  %v26_v21 = vld [vmem:[%s363_s2 + $0x20] sm:$0xff] }
   0x6   :  { %v247_v18 = vpack.c.bf16 %v29_v16, %v27_v15  ;;  %246 = vmatpush1.bf16.msra.mxu0 %v245_v13  ;;  %v241_v22 = vpack.c.bf16 %v38_v20, %v36_v19  ;;  %v28_v23 = vld [vmem:[%s363_s2 + $0x30] sm:$0xff]  ;;  %v30_v25 = vld [vmem:[%s364_s1] sm:$0xff]  ;;  %v31_v27 = vld [vmem:[%s364_s1 + $0x8] sm:$0xff] }
   0x7   :  { %240 = vmatprep.subr.bf16.mxu1 %v239_v17  ;;  %v249_v24 = vpack.c.bf16 %v28_v23, %v26_v21  ;;  %v20_v26 = vld [vmem:[%s365_s0] sm:$0xff]  ;;  %v21_v28 = vld [vmem:[%s365_s0 + $0x8] sm:$0xff] }
   0x8   :  { %248 = vmatprep.subr.bf16.mxu0 %v247_v18  ;;  %v207_v32 = vld [vmem:[%s366_s4] sm:$0x3] }
   0x9   :  { %242 = vmatpush1.bf16.msra.mxu1 %v241_v22  ;;  %v212_v35 = vrot.slane %v207_v32, %v211_v31  ;;  %v216_v38 = vrot.slane %v207_v32, %v215_v33 }
   0xa   :  { %250 = vmatpush1.bf16.msra.mxu0 %v249_v24 }
   0xc   :  { %231 = vmatmul.mubr.msk.f32.vlgmr.msra.gmra.mrb[0].mxu1 %vm40_vm0, %v30_v25 }
   0xd   :  { %233 = vmatmul.mubr.msk.f32.vlgmr.msra.gmra.mrb[0].mxu0 %vm40_vm0, %v20_v26  ;;  %117 = vmatprep.mubr.f32.mxu1 %v256_v3 }
   0xe   :  { %200 = vmatprep.mubr.f32.mxu0 %v256_v3 }
  0x10   :  { %232 = vmatmul.mubr.msk.f32.gmra.mrb[2].mxu1 %vm40_vm0, %v31_v27 }
  0x11   :  { %234 = vmatmul.mubr.msk.f32.gmra.mrb[2].mxu0 %vm40_vm0, %v21_v28 }
  0xdf   :  { %v113_v34 = vpop.f32.mrb[0].mxu1 }
  0xe0   :  { %v196_v36 = vpop.f32.mrb[0].mxu0  ;;  %v115_v37 = vpop.f32.mrb[1].mxu1 }
  0xe1   :  { %v197_v39 = vadd.f32 %v196_v36, %v113_v34  ;;  %v198_v40 = vpop.f32.mrb[1].mxu0 }
  0xe2   :  { %v199_v41 = vadd.f32 %v198_v40, %v115_v37 }
  0xe3   :  { %v219_v42 = vadd.f32 %v212_v35, %v197_v39  ;;  %v119_v43 = vpop.f32.mrb[2].mxu1 }
  0xe4   :  { %v220_v44 = vadd.f32 %v216_v38, %v199_v41  ;;  %v202_v45 = vpop.f32.mrb[2].mxu0  ;;  %v121_v46 = vpop.f32.mrb[3].mxu1 }
  0xe5   :  { %223 = vst [vmem:[%s367_s5] sm:$0xff] %v219_v42  ;;  %v203_v47 = vadd.f32 %v202_v45, %v119_v43  ;;  %v204_v48 = vpop.f32.mrb[3].mxu0 }
  0xe6   :  { %224 = vst [vmem:[%s367_s5 + $0x8] sm:$0xff] %v220_v44  ;;  %v205_v49 = vadd.f32 %v204_v48, %v121_v46 }
  0xe7   :  { %v221_v50 = vadd.f32 %v212_v35, %v203_v47 }
  0xe8   :  { %v222_v51 = vadd.f32 %v216_v38, %v205_v49 }
  0xe9   :  { %225 = vst [vmem:[%s367_s5 + $0x10] sm:$0xff] %v221_v50 }
  0xea   :  { %226 = vst [vmem:[%s367_s5 + $0x18] sm:$0xff] %v222_v51 }

// kernel: blstm_conversion_forward.5
= control target key start
LH: loop header
LB: loop body
LE: loop exit
PB: predicated region body
PF: predicated region fallthrough
CT: control target
= control target key end

     0   :  { %8 = vsyncpa [#allocation3], 0  ;;  %s175_s12 = smov [#allocation2]   ;;  %s238_s0 = inlined_call_operand.hbm [shape: f32[16,16], index: 0, kind: input, shape index: {}]   ;;  %s239_s1 = inlined_call_operand.vmem [shape: f32[16,256], index: 1, kind: input, shape index: {}]   ;;  %s240_s2 = inlined_call_operand.vmem [shape: f32[1,256], index: 2, kind: input, shape index: {}]   ;;  %s241_s3 = inlined_call_operand.vmem [shape: f32[16,256], index: 3, kind: output, shape index: {}]  }
   0x1   :  { %s14_s13 = sshll.u32 %s175_s12, 4  ;;  %s151_s16 = scalar_lea.hbm %s238_s0, 256  ;;  %s15_s13 = int_to_ptr.vmem [resolvable:$true] %s14_s13 }
   0x2   :  { %p152_p0 = scmp.ne.s32.totalorder %s238_s0, %s151_s16  ;;  %p155_p1 = scmp.lt.u32.totalorder %s151_s16, %s238_s0 }
   0x4   :  { %p157_p2 = pnand %p155_p1, %p152_p0 }
   0x6   :  { %160 = shalt.err (!%p157_p2)
}
   0x7   :  { %s161_s21 = scalar_lea.vmem %s15_s13, 256  ;;  %p166_p4 = scmp.lt.s32.totalorder %s15_s13, %s15_s13 }
   0x8   :  { %p162_p3 = scmp.ne.s32.totalorder %s15_s13, %s161_s21  ;;  %p167_p5 = scmp.lt.s32.totalorder %s161_s21, %s161_s21 }
   0xa   :  { %p168_p6 = por %p167_p5, %p166_p4 }
   0xc   :  { %p169_p7 = pnand %p168_p6, %p162_p3 }
   0xe   :  { %172 = shalt.err (!%p169_p7)
}
   0xf   :  { %s176_s22 = smov 128   ;;  %s177_s23 = smov 8  }
  0x10   :  { %20 = dma.hbm_to_vmem [thread:$0]  %s238_s0, 256, %s15_s13, [#allocation3], %s176_s22, %s176_s22, %s177_s23  }
  0x11   :  { %173 = dma.done.wait [#allocation3], 256  }
  0x12   :  { %174 = vsyncadd [#allocation3], 4294967040  ;;  %v178_v0 = vmov 0.0   ;;  %v31_v1 = vld [vmem:[%s239_s1 + $0x8] sm:$0xff]  ;;  %v33_v2 = vld [vmem:[%s239_s1 + $0x18] sm:$0xff]  ;;  %vm46_vm0 = vcmask 130048   ;;  %v36_v9 = vlaneseq }
  0x13   :  { %117 = vmatprep.mubr.f32.mxu0 %v178_v0  ;;  %123 = vmatprep.mubr.f32.mxu1 %v178_v0  ;;  %v30_v3 = vld [vmem:[%s239_s1] sm:$0xff]  ;;  %v141_v4 = vpack.c.bf16 %v33_v2, %v31_v1  ;;  %v32_v5 = vld [vmem:[%s239_s1 + $0x10] sm:$0xff]  ;;  %v29_v8 = vld [vmem:[#allocation2 + $0x8] sm:$0xff] }
  0x14   :  { %v143_v6 = vpack.c.bf16 %v32_v5, %v30_v3  ;;  %v28_v7 = vld [vmem:[#allocation2] sm:$0xff]  ;;  %v37_v10 = vshrl.u32 %v36_v9, 7 }
  0x15   :  { %142 = vmatprep.subr.bf16.mxu0 %v141_v4  ;;  %145 = vmatprep.subr.bf16.mxu1 %v141_v4  ;;  %v34_v12 = vld [vmem:[%s240_s2] sm:$0x3] }
  0x16   :  { %144 = vmatpush1.bf16.msra.mxu0 %v143_v6  ;;  %146 = vmatpush1.bf16.msra.mxu1 %v143_v6  ;;  %v38_v11 = vsub.s32 0, %v37_v10  ;;  %v42_v13 = vsub.s32 1, %v37_v10 }
  0x18   :  { %v39_v14 = vrot.slane %v34_v12, %v38_v11  ;;  %v43_v15 = vrot.slane %v34_v12, %v42_v13 }
  0x19   :  { %139 = vmatmul.mubr.msk.f32.vlgmr.msra.gmra.mrb[0].mxu0 %vm46_vm0, %v28_v7  ;;  %140 = vmatmul.mubr.msk.f32.vlgmr.msra.gmra.mrb[0].mxu1 %vm46_vm0, %v29_v8 }
  0xec   :  { %v119_v16 = vpop.f32.mrb[0].mxu0  ;;  %v125_v17 = vpop.f32.mrb[0].mxu1 }
  0xed   :  { %v120_v18 = vadd.f32 %v119_v16, %v39_v14  ;;  %v126_v19 = vadd.f32 %v125_v17, %v39_v14  ;;  %v121_v20 = vpop.f32.mrb[1].mxu0  ;;  %v127_v21 = vpop.f32.mrb[1].mxu1 }
  0xee   :  { %v122_v22 = vadd.f32 %v121_v20, %v43_v15  ;;  %v128_v23 = vadd.f32 %v127_v21, %v43_v15 }
  0xef   :  { %130 = vst [vmem:[%s241_s3] sm:$0xff] %v120_v18  ;;  %132 = vst [vmem:[%s241_s3 + $0x10] sm:$0xff] %v126_v19 }
  0xf0   :  { %131 = vst [vmem:[%s241_s3 + $0x8] sm:$0xff] %v122_v22  ;;  %133 = vst [vmem:[%s241_s3 + $0x18] sm:$0xff] %v128_v23 }
  0xf1   :  { %138 = vsyncpa [#allocation3], 1 }

// kernel: blstm_conversion_forward.9
= control target key start
LH: loop header
LB: loop body
LE: loop exit
PB: predicated region body
PF: predicated region fallthrough
CT: control target
= control target key end

     0   :  { %vm33_vm0 = vcmask 261120   ;;  %s395_s0 = inlined_call_operand.vmem [shape: f32[16,32], index: 0, kind: input, shape index: {}]   ;;  %s396_s1 = inlined_call_operand.vmem [shape: f32[16,32], index: 1, kind: input, shape index: {}]   ;;  %s397_s2 = inlined_call_operand.vmem [shape: f32[32,128], index: 2, kind: input, shape index: {}]   ;;  %s398_s3 = inlined_call_operand.vmem [shape: f32[32,128], index: 3, kind: input, shape index: {}]   ;;  %s399_s4 = inlined_call_operand.vmem [shape: f32[1,128], index: 4, kind: input, shape index: {}]   ;;  %s400_s5 = inlined_call_operand.hbm [shape: f32[16,128], index: 5, kind: output, shape index: {}]  }
   0x1   :  { %v29_v0 = vld [vmem:[%s398_s3] sm:$0xff]  ;;  %v30_v1 = vld [vmem:[%s398_s3 + $0x8] sm:$0xff]  ;;  %v31_v5 = vld [vmem:[%s398_s3 + $0x10] sm:$0xff] }
   0x2   :  { %v23_v2 = vld [vmem:[%s397_s2] sm:$0xff]  ;;  %v262_v3 = vpack.c.bf16 %v30_v1, %v29_v0  ;;  %v24_v4 = vld [vmem:[%s397_s2 + $0x8] sm:$0xff]  ;;  %v32_v6 = vld [vmem:[%s398_s3 + $0x18] sm:$0xff] }
   0x3   :  { %v270_v7 = vpack.c.bf16 %v24_v4, %v23_v2  ;;  %v266_v8 = vpack.c.bf16 %v32_v6, %v31_v5  ;;  %v25_v9 = vld [vmem:[%s397_s2 + $0x10] sm:$0xff]  ;;  %v26_v10 = vld [vmem:[%s397_s2 + $0x18] sm:$0xff]  ;;  %v27_v11 = vld [vmem:[%s396_s1] sm:$0xff] }
   0x4   :  { %263 = vmatprep.subr.bf16.mxu1 %v262_v3  ;;  %v274_v12 = vpack.c.bf16 %v26_v10, %v25_v9  ;;  %248 = vmatprep.mubr.msk.f32.mxu1 %vm33_vm0, %v27_v11  ;;  %v21_v13 = vld [vmem:[%s395_s0] sm:$0xff] }
   0x5   :  { %271 = vmatprep.subr.bf16.mxu0 %v270_v7  ;;  %265 = vmatpush3.bf16.msra.mxu1 %v262_v3 }
   0x6   :  { %10 = vsyncpa [#allocation3], 0  ;;  %273 = vmatpush3.bf16.msra.mxu0 %v270_v7  ;;  %267 = vmatprep.subr.bf16.mxu1 %v266_v8  ;;  %v28_v14 = vld [vmem:[%s396_s1 + $0x8] sm:$0xff]  ;;  %v227_v18 = vld [vmem:[%s399_s4] ss:$0 sm:$0xff]  ;;  %s307_s17 = smov [#allocation2]  }
   0x7   :  { %275 = vmatprep.subr.bf16.mxu0 %v274_v12  ;;  %259 = vmatprep.mubr.msk.f32.mxu0 %vm33_vm0, %v21_v13  ;;  %v22_v15 = vld [vmem:[%s395_s0 + $0x8] sm:$0xff]  ;;  %s212_s18 = sshll.u32 %s307_s17, 4  ;;  %s213_s18 = int_to_ptr.vmem [resolvable:$true] %s212_s18 }
   0x8   :  { %s283_s0 = scalar_lea.vmem %s213_s18, 256  ;;  %p288_p1 = scmp.lt.s32.totalorder %s213_s18, %s213_s18 }
   0x9   :  { %269 = vmatpush3.bf16.msra.mxu1 %v266_v8  ;;  %p284_p0 = scmp.ne.s32.totalorder %s213_s18, %s283_s0  ;;  %p289_p2 = scmp.lt.s32.totalorder %s283_s0, %s283_s0 }
   0xa   :  { %277 = vmatpush3.bf16.msra.mxu0 %v274_v12 }
   0xb   :  { %p290_p3 = por %p289_p2, %p288_p1 }
   0xc   :  { %249 = vmatmul.mubr.msk.f32.vlgmr.msra.gmra.mrb[0].mxu1 %vm33_vm0, %v28_v14 }
   0xd   :  { %260 = vmatmul.mubr.msk.f32.vlgmr.msra.gmra.mrb[0].mxu0 %vm33_vm0, %v22_v15  ;;  %p291_p4 = pnand %p290_p3, %p284_p0 }
  0xdf   :  { %v250_v16 = vpop.f32.mrb[0].mxu1 }
  0xe0   :  { %v261_v17 = vpop.f32.mrb[0].mxu0  ;;  %v106_v19 = vpop.f32.mrb[1].mxu1 }
  0xe1   :  { %v193_v20 = vadd.f32 %v261_v17, %v250_v16  ;;  %v187_v21 = vpop.f32.mrb[1].mxu0 }
  0xe2   :  { %v188_v22 = vadd.f32 %v187_v21, %v106_v19 }
  0xe3   :  { %v204_v23 = vadd.f32 %v227_v18, %v193_v20 }
  0xe4   :  { %v203_v24 = vadd.f32 %v227_v18, %v188_v22 }
  0xe5   :  { %206 = vst [vmem:[#allocation2 + $0x8] sm:$0xff] %v204_v23 }
  0xe6   :  { %205 = vst [vmem:[#allocation2] sm:$0xff] %v203_v24 }
  0xe7   :  { %294 = shalt.err (!%p291_p4)
}
  0xe8   :  { %s295_s19 = scalar_lea.hbm %s400_s5, 256 }
  0xe9   :  { %p296_p5 = scmp.ne.s32.totalorder %s400_s5, %s295_s19  ;;  %p299_p6 = scmp.lt.u32.totalorder %s295_s19, %s400_s5 }
  0xeb   :  { %p301_p7 = pnand %p299_p6, %p296_p5 }
  0xed   :  { %304 = shalt.err (!%p301_p7)
}
  0xee   :  { %s308_s24 = smov 128   ;;  %s309_s25 = smov 8  }
  0xef   :  { %218 = dma.vmem_to_hbm [thread:$0]  %s213_s18, 256, %s400_s5, [#allocation3], %s308_s24, %s308_s24, %s309_s25  }
  0xf0   :  { %305 = dma.done.wait [#allocation3], 256  }
  0xf1   :  { %306 = vsyncadd [#allocation3], 4294967040 }
  0xf2   :  { %222 = vsyncpa [#allocation3], 1 }

// kernel: blstm_conversion_forward.6
= control target key start
LH: loop header
LB: loop body
LE: loop exit
PB: predicated region body
PF: predicated region fallthrough
CT: control target
= control target key end

     0   :  { %vm180_vm0 = vcmask 257024   ;;  %v1468_v7 = vmov 0.0   ;;  %vm192_vm1 = vcmask 261120   ;;  %vm278_vm2 = vcmask 1041408   ;;  %s1469_s8 = smov 64   ;;  %s1470_s9 = smov 32   ;;  %s1765_s0 = inlined_call_operand.vmem [shape: f32[8,2,256], index: 0, kind: input, shape index: {}, may-alias: {0,1}]   ;;  %s1766_s1 = inlined_call_operand.vmem [shape: f32[8,2,256], index: 1, kind: input, shape index: {}, may-alias: {0,1}]   ;;  %s1767_s2 = inlined_call_operand.vmem [shape: f32[32,256], index: 2, kind: input, shape index: {}]   ;;  %s1768_s3 = inlined_call_operand.vmem [shape: f32[8,2,32], index: 3, kind: output, shape index: {0}]   ;;  %s1769_s4 = inlined_call_operand.vmem [shape: f32[8,2,32], index: 4, kind: output, shape index: {1}]  }
   0x1   :  { %v185_v0 = vld [vmem:[%s1767_s2 + $0x8] sm:$0xff]  ;;  %v187_v1 = vld [vmem:[%s1767_s2 + $0x18] sm:$0xff]  ;;  %v184_v2 = vld [vmem:[%s1767_s2] sm:$0xff]  ;;  %181 = vst.msk [vmem:[#allocation2] sm:$0xf] %vm180_vm0, %v1468_v7  ;;  %260 = vmatprep.mubr.f32.mxu0 %v1468_v7  ;;  %399 = vmatprep.mubr.f32.mxu1 %v1468_v7  ;;  %s1471_s10 = smov 96  }
   0x2   :  { %v1506_v3 = vpack.c.bf16 %v187_v1, %v185_v0  ;;  %v186_v4 = vld [vmem:[%s1767_s2 + $0x10] sm:$0xff]  ;;  %v189_v5 = vld [vmem:[%s1767_s2 + $0x28] sm:$0xff]  ;;  %v191_v6 = vld [vmem:[%s1767_s2 + $0x38] sm:$0xff]  ;;  %182 = vst.msk [vmem:[#allocation3] sm:$0xf] %vm180_vm0, %v1468_v7  ;;  %vm318_vm3 = vcmask 254976  }
   0x3   :  { %v1523_v8 = vpack.c.bf16 %v186_v4, %v184_v2  ;;  %v1525_v9 = vpack.c.bf16 %v191_v6, %v189_v5  ;;  %v188_v10 = vld [vmem:[%s1767_s2 + $0x20] sm:$0xff]  ;;  %v190_v11 = vld [vmem:[%s1767_s2 + $0x30] sm:$0xff]  ;;  %v1329_v15 = vld [vmem:[%s1766_s1 + $0x1e] sm:$0x3]  ;;  %vm321_vm4 = vcmask 257026  }
   0x4   :  { %v27_v12 = vld [vmem:[%s1765_s0] sm:$0x3]  ;;  %1353 = vmatprep.subr.bf16.mxu0 %v1506_v3  ;;  %1361 = vmatprep.subr.bf16.mxu1 %v1506_v3  ;;  %v1539_v13 = vpack.c.bf16 %v190_v11, %v188_v10  ;;  %117 = vst [vmem:[#allocation5 + $0xe] sm:$0x3] %v1329_v15  ;;  %v29_v38 = vld [vmem:[%s1765_s0 + $0x4] sm:$0x3] }
   0x5   :  { %28 = vst [vmem:[#allocation4] sm:$0x3] %v27_v12  ;;  %1355 = vmatpush1.bf16.msra.mxu0 %v1523_v8  ;;  %1363 = vmatpush1.bf16.msra.mxu1 %v1523_v8  ;;  %30 = vst [vmem:[#allocation4 + $0x2] sm:$0x3] %v29_v38  ;;  %v1328_v45 = vld [vmem:[%s1766_s1 + $0x1a] sm:$0x3] }
   0x6   :  { %1357 = vmatprep.subr.bf16.mxu0 %v1525_v9  ;;  %1365 = vmatprep.subr.bf16.mxu1 %v1525_v9  ;;  %115 = vst [vmem:[#allocation5 + $0xc] sm:$0x3] %v1328_v45  ;;  %v31_v4 = vld [vmem:[%s1765_s0 + $0x8] sm:$0x3]  ;;  %v1327_v15 = vld [vmem:[%s1766_s1 + $0x16] sm:$0x3] }
   0x7   :  { %32 = vst [vmem:[#allocation4 + $0x4] sm:$0x3] %v31_v4  ;;  %113 = vst [vmem:[#allocation5 + $0xa] sm:$0x3] %v1327_v15 }
   0x8   :  { %v183_v14 = vld [vmem:[#allocation2] sm:$0xf] }
   0x9   :  { %1359 = vmatpush1.bf16.msra.mxu0 %v1539_v13  ;;  %1367 = vmatpush1.bf16.msra.mxu1 %v1539_v13  ;;  %v285_v26 = vld [vmem:[#allocation3] sm:$0xf] }
   0xa   :  { %1369 = vmatprep.subr.bf16.mxu0 %v1506_v3  ;;  %1377 = vmatprep.subr.bf16.mxu1 %v1506_v3 }
   0xb   :  { %v270_v18 = vld [vmem:[#allocation5 + $0xe] sm:$0x3] }
   0xc   :  { %1330 = vmatmul.mubr.msk.f32.vlgmr.msra.gmra.mrb[0].mxu0 %vm192_vm1, %v183_v14  ;;  %v267_v20 = vld [vmem:[#allocation4] sm:$0x3]  ;;  %v407_v50 = vld [vmem:[#allocation4 + $0x2] sm:$0x3] }
   0xd   :  { %1371 = vmatpush1.bf16.msra.mxu0 %v1523_v8  ;;  %536 = vmatprep.mubr.f32.mxu0 %v1468_v7  ;;  %v410_v48 = vld [vmem:[#allocation5 + $0xc] sm:$0x3] }
   0xe   :  { %1373 = vmatprep.subr.bf16.mxu0 %v1525_v9 }
  0x11   :  { %1375 = vmatpush1.bf16.msra.mxu0 %v1539_v13 }
  0x12   :  { %1385 = vmatprep.subr.bf16.mxu0 %v1506_v3 }
  0xdf   :  { %v262_v16 = vpop.f32.mrb[0].mxu0 }
  0xe0   :  { %v264_v17 = vpop.f32.mrb[1].mxu0  ;;  %v268_v22 = vadd.f32 %v267_v20, %v262_v16  ;;  %v544_v20 = vld [vmem:[#allocation4 + $0x4] sm:$0x3] }
  0xe1   :  { %v272_v19 = vrot.slane %v264_v17, 2 }
  0xe3   :  { %v274_v21 = vadd.f32 %v272_v19, %v270_v18  ;;  %v547_v18 = vld [vmem:[#allocation5 + $0xa] sm:$0x3] }
  0xe5   :  { %v276_v23 = vrot.slane %v274_v21, 6 }
  0xe7   :  { %v279_v24 = vsel %vm278_vm2, %v268_v22, %v276_v23 }
  0xe8   :  { %1420 = vtanh.f32 %v279_v24  ;;  %v280_v27 = vmul.f32 0.5, %v279_v24 }
  0xea   :  { %1422 = vtanh.f32 %v280_v27 }
  0xf2   :  { %v1421_v25 = vpop.eup %1420 }
  0xf3   :  { %292 = vrot.lane.b32.xlu0 %v1421_v25, %s1469_s8 }
  0xf4   :  { %v1423_v28 = vpop.eup %1422 }
  0xf5   :  { %v282_v29 = vmul.f32 0.5, %v1423_v28 }
  0xf7   :  { %287 = vrot.lane.b32.xlu0 %v285_v26, %s1470_s9  ;;  %v283_v30 = vadd.f32 0.5, %v282_v29 }
 0x165   :  { %v293_v31 = vpop.permute.xlu0 %292 }
 0x166   :  { %v295_v32 = vmul.f32 %v293_v31, %v283_v30 }
 0x168   :  { %297 = vrot.lane.b32.xlu1 %v295_v32, %s1470_s9 }
 0x169   :  { %v288_v33 = vpop.permute.xlu0 %287 }
 0x16a   :  { %v290_v34 = vmul.f32 %v288_v33, %v283_v30 }
 0x1da   :  { %v298_v35 = vpop.permute.xlu1 %297 }
 0x1db   :  { %v300_v36 = vadd.f32 %v298_v35, %v290_v34 }
 0x1dd   :  { %1424 = vtanh.f32 %v300_v36 }
 0x1e7   :  { %v1425_v37 = vpop.eup %1424 }
 0x1e8   :  { %303 = vrot.lane.b32.xlu1 %v1425_v37, %s1469_s8  ;;  %v33_v37 = vld [vmem:[%s1765_s0 + $0xc] sm:$0x3] }
 0x1e9   :  { %34 = vst [vmem:[#allocation4 + $0x6] sm:$0x3] %v33_v37 }
 0x1ec   :  { %308 = vrot.lane.b32.xlu1 %v300_v36, %s1471_s10 }
 0x25a   :  { %v304_v39 = vpop.permute.xlu1 %303 }
 0x25b   :  { %v306_v40 = vmul.f32 %v304_v39, %v283_v30 }
 0x25d   :  { %314 = vrot.lane.b32.xlu0 %v306_v40, %s1470_s9 }
 0x25e   :  { %v309_v41 = vpop.permute.xlu1 %308 }
 0x25f   :  { %312 = vst.msk [vmem:[#allocation3] sm:$0xf] %vm180_vm0, %v309_v41 }
 0x266   :  { %v424_v42 = vld [vmem:[#allocation3] sm:$0xf] }
 0x267   :  { %426 = vrot.lane.b32.xlu1 %v424_v42, %s1470_s9 }
 0x2cf   :  { %v315_v43 = vpop.permute.xlu0 %314 }
 0x2d0   :  { %317 = vst.msk [vmem:[#allocation2] sm:$0xf] %vm180_vm0, %v315_v43 }
 0x2d1   :  { %319 = vst.msk [vmem:[%s1768_s3] sm:$0x3] %vm318_vm3, %v315_v43 }
 0x2d2   :  { %1331 = vst.msk [vmem:[%s1769_s4 + $0xc] sm:$0xc] %vm321_vm4, %v315_v43 }
 0x2d7   :  { %v323_v44 = vld [vmem:[#allocation2] sm:$0xf] }
 0x2d8   :  { %1332 = vmatmul.mubr.msk.f32.vlgmr.msra.gmra.mrb[0].mxu1 %vm192_vm1, %v323_v44  ;;  %v1326_v44 = vld [vmem:[%s1766_s1 + $0x12] sm:$0x3] }
 0x2d9   :  { %1379 = vmatpush1.bf16.msra.mxu1 %v1523_v8  ;;  %673 = vmatprep.mubr.f32.mxu1 %v1468_v7  ;;  %v427_v62 = vpop.permute.xlu1 %426  ;;  %111 = vst [vmem:[#allocation5 + $0x8] sm:$0x3] %v1326_v44 }
 0x2da   :  { %1381 = vmatprep.subr.bf16.mxu1 %v1525_v9 }
 0x2dd   :  { %1383 = vmatpush1.bf16.msra.mxu1 %v1539_v13 }
 0x2de   :  { %1393 = vmatprep.subr.bf16.mxu1 %v1506_v3 }
 0x3ab   :  { %v401_v46 = vpop.f32.mrb[0].mxu1 }
 0x3ac   :  { %v403_v47 = vpop.f32.mrb[1].mxu1  ;;  %v408_v52 = vadd.f32 %v407_v50, %v401_v46 }
 0x3ad   :  { %v412_v49 = vrot.slane %v403_v47, 2  ;;  %v684_v47 = vld [vmem:[#allocation5 + $0x8] sm:$0x3] }
 0x3af   :  { %v414_v51 = vadd.f32 %v412_v49, %v410_v48  ;;  %v681_v49 = vld [vmem:[#allocation4 + $0x6] sm:$0x3] }
 0x3b1   :  { %v416_v53 = vrot.slane %v414_v51, 6 }
 0x3b3   :  { %v418_v54 = vsel %vm278_vm2, %v408_v52, %v416_v53 }
 0x3b4   :  { %1426 = vtanh.f32 %v418_v54  ;;  %v419_v56 = vmul.f32 0.5, %v418_v54 }
 0x3b6   :  { %1428 = vtanh.f32 %v419_v56 }
 0x3be   :  { %v1427_v55 = vpop.eup %1426 }
 0x3bf   :  { %431 = vrot.lane.b32.xlu0 %v1427_v55, %s1469_s8 }
 0x3c0   :  { %v1429_v57 = vpop.eup %1428 }
 0x3c1   :  { %v421_v58 = vmul.f32 0.5, %v1429_v57 }
 0x3c3   :  { %v422_v59 = vadd.f32 0.5, %v421_v58 }
 0x3c5   :  { %v429_v63 = vmul.f32 %v427_v62, %v422_v59 }
 0x431   :  { %v432_v60 = vpop.permute.xlu0 %431 }
 0x432   :  { %v434_v61 = vmul.f32 %v432_v60, %v422_v59 }
 0x434   :  { %436 = vrot.lane.b32.xlu0 %v434_v61, %s1470_s9 }
 0x4a6   :  { %v437_v0 = vpop.permute.xlu0 %436 }
 0x4a7   :  { %v439_v1 = vadd.f32 %v437_v0, %v429_v63 }
 0x4a9   :  { %1430 = vtanh.f32 %v439_v1 }
 0x4b3   :  { %v1431_v2 = vpop.eup %1430 }
 0x4b4   :  { %442 = vrot.lane.b32.xlu1 %v1431_v2, %s1469_s8 }
 0x4b8   :  { %447 = vrot.lane.b32.xlu1 %v439_v1, %s1471_s10  ;;  %v35_v1 = vld [vmem:[%s1765_s0 + $0x10] sm:$0x3] }
 0x4b9   :  { %36 = vst [vmem:[#allocation4 + $0x8] sm:$0x3] %v35_v1 }
 0x526   :  { %v443_v5 = vpop.permute.xlu1 %442 }
 0x527   :  { %v445_v6 = vmul.f32 %v443_v5, %v422_v59 }
 0x529   :  { %452 = vrot.lane.b32.xlu0 %v445_v6, %s1470_s9 }
 0x52a   :  { %v448_v10 = vpop.permute.xlu1 %447 }
 0x52b   :  { %450 = vst.msk [vmem:[#allocation3] sm:$0xf] %vm180_vm0, %v448_v10 }
 0x532   :  { %v561_v11 = vld [vmem:[#allocation3] sm:$0xf] }
 0x533   :  { %563 = vrot.lane.b32.xlu1 %v561_v11, %s1470_s9 }
 0x59b   :  { %v453_v12 = vpop.permute.xlu0 %452 }
 0x59c   :  { %455 = vst.msk [vmem:[#allocation2] sm:$0xf] %vm180_vm0, %v453_v12 }
 0x59d   :  { %1333 = vst.msk [vmem:[%s1768_s3 + $0x2] sm:$0x3] %vm318_vm3, %v453_v12 }
 0x59e   :  { %1334 = vst.msk [vmem:[%s1769_s4 + $0xa] sm:$0xc] %vm321_vm4, %v453_v12  ;;  %v1325_v12 = vld [vmem:[%s1766_s1 + $0xe] sm:$0x3] }
 0x59f   :  { %109 = vst [vmem:[#allocation5 + $0x6] sm:$0x3] %v1325_v12 }
 0x5a3   :  { %v460_v14 = vld [vmem:[#allocation2] sm:$0xf] }
 0x5a4   :  { %1335 = vmatmul.mubr.msk.f32.vlgmr.msra.gmra.mrb[2].mxu0 %vm192_vm1, %v460_v14 }
 0x5a5   :  { %1387 = vmatpush1.bf16.msra.mxu0 %v1523_v8  ;;  %810 = vmatprep.mubr.f32.mxu0 %v1468_v7  ;;  %v564_v32 = vpop.permute.xlu1 %563 }
 0x5a6   :  { %1389 = vmatprep.subr.bf16.mxu0 %v1525_v9 }
 0x5a9   :  { %1391 = vmatpush1.bf16.msra.mxu0 %v1539_v13 }
 0x5aa   :  { %1401 = vmatprep.subr.bf16.mxu0 %v1506_v3 }
 0x677   :  { %v538_v16 = vpop.f32.mrb[2].mxu0 }
 0x678   :  { %v540_v17 = vpop.f32.mrb[3].mxu0  ;;  %v545_v22 = vadd.f32 %v544_v20, %v538_v16  ;;  %v821_v16 = vld [vmem:[#allocation5 + $0x6] sm:$0x3] }
 0x679   :  { %v549_v19 = vrot.slane %v540_v17, 2 }
 0x67b   :  { %v551_v21 = vadd.f32 %v549_v19, %v547_v18  ;;  %v818_v18 = vld [vmem:[#allocation4 + $0x8] sm:$0x3] }
 0x67d   :  { %v553_v23 = vrot.slane %v551_v21, 6 }
 0x67f   :  { %v555_v24 = vsel %vm278_vm2, %v545_v22, %v553_v23 }
 0x680   :  { %1432 = vtanh.f32 %v555_v24  ;;  %v556_v26 = vmul.f32 0.5, %v555_v24 }
 0x682   :  { %1434 = vtanh.f32 %v556_v26 }
 0x68a   :  { %v1433_v25 = vpop.eup %1432 }
 0x68b   :  { %568 = vrot.lane.b32.xlu0 %v1433_v25, %s1469_s8 }
 0x68c   :  { %v1435_v27 = vpop.eup %1434 }
 0x68d   :  { %v558_v28 = vmul.f32 0.5, %v1435_v27 }
 0x68f   :  { %v559_v29 = vadd.f32 0.5, %v558_v28 }
 0x691   :  { %v566_v33 = vmul.f32 %v564_v32, %v559_v29 }
 0x6fd   :  { %v569_v30 = vpop.permute.xlu0 %568 }
 0x6fe   :  { %v571_v31 = vmul.f32 %v569_v30, %v559_v29 }
 0x700   :  { %573 = vrot.lane.b32.xlu0 %v571_v31, %s1470_s9 }
 0x772   :  { %v574_v34 = vpop.permute.xlu0 %573 }
 0x773   :  { %v576_v35 = vadd.f32 %v574_v34, %v566_v33 }
 0x775   :  { %1436 = vtanh.f32 %v576_v35 }
 0x77f   :  { %v1437_v36 = vpop.eup %1436 }
 0x780   :  { %579 = vrot.lane.b32.xlu1 %v1437_v36, %s1469_s8 }
 0x784   :  { %584 = vrot.lane.b32.xlu1 %v576_v35, %s1471_s10  ;;  %v37_v35 = vld [vmem:[%s1765_s0 + $0x14] sm:$0x3] }
 0x785   :  { %38 = vst [vmem:[#allocation4 + $0xa] sm:$0x3] %v37_v35 }
 0x7f2   :  { %v580_v38 = vpop.permute.xlu1 %579 }
 0x7f3   :  { %v582_v39 = vmul.f32 %v580_v38, %v559_v29 }
 0x7f5   :  { %589 = vrot.lane.b32.xlu0 %v582_v39, %s1470_s9 }
 0x7f6   :  { %v585_v40 = vpop.permute.xlu1 %584 }
 0x7f7   :  { %587 = vst.msk [vmem:[#allocation3] sm:$0xf] %vm180_vm0, %v585_v40 }
 0x7fe   :  { %v698_v41 = vld [vmem:[#allocation3] sm:$0xf] }
 0x7ff   :  { %700 = vrot.lane.b32.xlu1 %v698_v41, %s1470_s9 }
 0x867   :  { %v590_v42 = vpop.permute.xlu0 %589 }
 0x868   :  { %592 = vst.msk [vmem:[#allocation2] sm:$0xf] %vm180_vm0, %v590_v42 }
 0x869   :  { %1336 = vst.msk [vmem:[%s1768_s3 + $0x4] sm:$0x3] %vm318_vm3, %v590_v42 }
 0x86a   :  { %1337 = vst.msk [vmem:[%s1769_s4 + $0x8] sm:$0xc] %vm321_vm4, %v590_v42  ;;  %v1324_v42 = vld [vmem:[%s1766_s1 + $0xa] sm:$0x3] }
 0x86b   :  { %107 = vst [vmem:[#allocation5 + $0x4] sm:$0x3] %v1324_v42 }
 0x86f   :  { %v597_v43 = vld [vmem:[#allocation2] sm:$0xf] }
 0x870   :  { %1338 = vmatmul.mubr.msk.f32.vlgmr.msra.gmra.mrb[2].mxu1 %vm192_vm1, %v597_v43 }
 0x871   :  { %1395 = vmatpush1.bf16.msra.mxu1 %v1523_v8  ;;  %947 = vmatprep.mubr.f32.mxu1 %v1468_v7  ;;  %v701_v60 = vpop.permute.xlu1 %700 }
 0x872   :  { %1397 = vmatprep.subr.bf16.mxu1 %v1525_v9 }
 0x875   :  { %1399 = vmatpush1.bf16.msra.mxu1 %v1539_v13 }
 0x876   :  { %1409 = vmatprep.subr.bf16.mxu1 %v1506_v3 }
 0x943   :  { %v675_v45 = vpop.f32.mrb[2].mxu1 }
 0x944   :  { %v677_v46 = vpop.f32.mrb[3].mxu1  ;;  %v682_v51 = vadd.f32 %v681_v49, %v675_v45  ;;  %v958_v45 = vld [vmem:[#allocation5 + $0x4] sm:$0x3] }
 0x945   :  { %v686_v48 = vrot.slane %v677_v46, 2 }
 0x947   :  { %v688_v50 = vadd.f32 %v686_v48, %v684_v47  ;;  %v955_v47 = vld [vmem:[#allocation4 + $0xa] sm:$0x3] }
 0x949   :  { %v690_v52 = vrot.slane %v688_v50, 6 }
 0x94b   :  { %v692_v53 = vsel %vm278_vm2, %v682_v51, %v690_v52 }
 0x94c   :  { %1438 = vtanh.f32 %v692_v53  ;;  %v693_v3 = vmul.f32 0.5, %v692_v53 }
 0x94e   :  { %1440 = vtanh.f32 %v693_v3 }
 0x956   :  { %v1439_v54 = vpop.eup %1438 }
 0x957   :  { %705 = vrot.lane.b32.xlu0 %v1439_v54, %s1469_s8 }
 0x958   :  { %v1441_v55 = vpop.eup %1440 }
 0x959   :  { %v695_v56 = vmul.f32 0.5, %v1441_v55 }
 0x95b   :  { %v696_v57 = vadd.f32 0.5, %v695_v56 }
 0x95d   :  { %v703_v61 = vmul.f32 %v701_v60, %v696_v57 }
 0x9c9   :  { %v706_v58 = vpop.permute.xlu0 %705 }
 0x9ca   :  { %v708_v59 = vmul.f32 %v706_v58, %v696_v57 }
 0x9cc   :  { %710 = vrot.lane.b32.xlu0 %v708_v59, %s1470_s9  ;;  %v39_v59 = vld [vmem:[%s1765_s0 + $0x18] sm:$0x3] }
 0x9cd   :  { %40 = vst [vmem:[#allocation4 + $0xc] sm:$0x3] %v39_v59 }
 0xa3e   :  { %v711_v62 = vpop.permute.xlu0 %710 }
 0xa3f   :  { %v713_v63 = vadd.f32 %v711_v62, %v703_v61 }
 0xa41   :  { %1442 = vtanh.f32 %v713_v63 }
 0xa4b   :  { %v1443_v0 = vpop.eup %1442 }
 0xa4c   :  { %716 = vrot.lane.b32.xlu1 %v1443_v0, %s1469_s8 }
 0xa50   :  { %721 = vrot.lane.b32.xlu1 %v713_v63, %s1471_s10 }
 0xabe   :  { %v717_v2 = vpop.permute.xlu1 %716 }
 0xabf   :  { %v719_v4 = vmul.f32 %v717_v2, %v696_v57  ;;  %v1323_v2 = vld [vmem:[%s1766_s1 + $0x6] sm:$0x3] }
 0xac0   :  { %105 = vst [vmem:[#allocation5 + $0x2] sm:$0x3] %v1323_v2 }
 0xac1   :  { %726 = vrot.lane.b32.xlu0 %v719_v4, %s1470_s9 }
 0xac2   :  { %v722_v5 = vpop.permute.xlu1 %721 }
 0xac3   :  { %724 = vst.msk [vmem:[#allocation3] sm:$0xf] %vm180_vm0, %v722_v5 }
 0xaca   :  { %v835_v6 = vld [vmem:[#allocation3] sm:$0xf] }
 0xacb   :  { %837 = vrot.lane.b32.xlu1 %v835_v6, %s1470_s9  ;;  %v1095_v6 = vld [vmem:[#allocation5 + $0x2] sm:$0x3] }
 0xb33   :  { %v727_v10 = vpop.permute.xlu0 %726 }
 0xb34   :  { %729 = vst.msk [vmem:[#allocation2] sm:$0xf] %vm180_vm0, %v727_v10 }
 0xb35   :  { %1339 = vst.msk [vmem:[%s1768_s3 + $0x6] sm:$0x3] %vm318_vm3, %v727_v10 }
 0xb36   :  { %1340 = vst.msk [vmem:[%s1769_s4 + $0x6] sm:$0xc] %vm321_vm4, %v727_v10 }
 0xb3b   :  { %v734_v11 = vld [vmem:[#allocation2] sm:$0xf] }
 0xb3c   :  { %1341 = vmatmul.mubr.msk.f32.vlgmr.msra.gmra.mrb[4].mxu0 %vm192_vm1, %v734_v11  ;;  %v1092_v11 = vld [vmem:[#allocation4 + $0xc] sm:$0x3] }
 0xb3d   :  { %1403 = vmatpush1.bf16.msra.mxu0 %v1523_v8  ;;  %1084 = vmatprep.mubr.f32.mxu0 %v1468_v7  ;;  %v838_v30 = vpop.permute.xlu1 %837 }
 0xb3e   :  { %1405 = vmatprep.subr.bf16.mxu0 %v1525_v9 }
 0xb41   :  { %1407 = vmatpush1.bf16.msra.mxu0 %v1539_v13 }
 0xc0f   :  { %v812_v14 = vpop.f32.mrb[4].mxu0 }
 0xc10   :  { %v814_v15 = vpop.f32.mrb[5].mxu0  ;;  %v819_v20 = vadd.f32 %v818_v18, %v812_v14 }
 0xc11   :  { %v823_v17 = vrot.slane %v814_v15, 2 }
 0xc13   :  { %v825_v19 = vadd.f32 %v823_v17, %v821_v16 }
 0xc15   :  { %v827_v21 = vrot.slane %v825_v19, 6 }
 0xc17   :  { %v829_v22 = vsel %vm278_vm2, %v819_v20, %v827_v21 }
 0xc18   :  { %1444 = vtanh.f32 %v829_v22  ;;  %v830_v24 = vmul.f32 0.5, %v829_v22 }
 0xc1a   :  { %1446 = vtanh.f32 %v830_v24 }
 0xc22   :  { %v1445_v23 = vpop.eup %1444 }
 0xc23   :  { %842 = vrot.lane.b32.xlu0 %v1445_v23, %s1469_s8 }
 0xc24   :  { %v1447_v25 = vpop.eup %1446 }
 0xc25   :  { %v832_v26 = vmul.f32 0.5, %v1447_v25 }
 0xc27   :  { %v833_v27 = vadd.f32 0.5, %v832_v26 }
 0xc29   :  { %v840_v31 = vmul.f32 %v838_v30, %v833_v27 }
 0xc95   :  { %v843_v28 = vpop.permute.xlu0 %842 }
 0xc96   :  { %v845_v29 = vmul.f32 %v843_v28, %v833_v27 }
 0xc98   :  { %847 = vrot.lane.b32.xlu0 %v845_v29, %s1470_s9  ;;  %v41_v29 = vld [vmem:[%s1765_s0 + $0x1c] sm:$0x3] }
 0xc99   :  { %42 = vst [vmem:[#allocation4 + $0xe] sm:$0x3] %v41_v29 }
 0xd0a   :  { %v848_v32 = vpop.permute.xlu0 %847 }
 0xd0b   :  { %v850_v33 = vadd.f32 %v848_v32, %v840_v31 }
 0xd0d   :  { %1448 = vtanh.f32 %v850_v33 }
 0xd17   :  { %v1449_v34 = vpop.eup %1448 }
 0xd18   :  { %853 = vrot.lane.b32.xlu1 %v1449_v34, %s1469_s8 }
 0xd1c   :  { %858 = vrot.lane.b32.xlu1 %v850_v33, %s1471_s10 }
 0xd8a   :  { %v854_v36 = vpop.permute.xlu1 %853 }
 0xd8b   :  { %v856_v37 = vmul.f32 %v854_v36, %v833_v27  ;;  %v1322_v36 = vld [vmem:[%s1766_s1 + $0x2] sm:$0x3] }
 0xd8c   :  { %103 = vst [vmem:[#allocation5] sm:$0x3] %v1322_v36 }
 0xd8d   :  { %863 = vrot.lane.b32.xlu0 %v856_v37, %s1470_s9 }
 0xd8e   :  { %v859_v38 = vpop.permute.xlu1 %858 }
 0xd8f   :  { %861 = vst.msk [vmem:[#allocation3] sm:$0xf] %vm180_vm0, %v859_v38 }
 0xd96   :  { %v972_v39 = vld [vmem:[#allocation3] sm:$0xf] }
 0xd97   :  { %974 = vrot.lane.b32.xlu1 %v972_v39, %s1470_s9  ;;  %v1231_v39 = vld [vmem:[#allocation5] sm:$0x3] }
 0xdff   :  { %v864_v40 = vpop.permute.xlu0 %863 }
 0xe00   :  { %866 = vst.msk [vmem:[#allocation2] sm:$0xf] %vm180_vm0, %v864_v40 }
 0xe01   :  { %1342 = vst.msk [vmem:[%s1768_s3 + $0x8] sm:$0x3] %vm318_vm3, %v864_v40 }
 0xe02   :  { %1343 = vst.msk [vmem:[%s1769_s4 + $0x4] sm:$0xc] %vm321_vm4, %v864_v40 }
 0xe07   :  { %v871_v41 = vld [vmem:[#allocation2] sm:$0xf] }
 0xe08   :  { %1344 = vmatmul.mubr.msk.f32.vlgmr.msra.gmra.mrb[4].mxu1 %vm192_vm1, %v871_v41  ;;  %v1229_v41 = vld [vmem:[#allocation4 + $0xe] sm:$0x3] }
 0xe09   :  { %1411 = vmatpush1.bf16.msra.mxu1 %v1523_v8  ;;  %1221 = vmatprep.mubr.f32.mxu1 %v1468_v7  ;;  %v975_v3 = vpop.permute.xlu1 %974 }
 0xe0a   :  { %1413 = vmatprep.subr.bf16.mxu1 %v1525_v9 }
 0xe0d   :  { %1415 = vmatpush1.bf16.msra.mxu1 %v1539_v13 }
 0xedb   :  { %v949_v43 = vpop.f32.mrb[4].mxu1 }
 0xedc   :  { %v951_v44 = vpop.f32.mrb[5].mxu1  ;;  %v956_v49 = vadd.f32 %v955_v47, %v949_v43 }
 0xedd   :  { %v960_v46 = vrot.slane %v951_v44, 2 }
 0xedf   :  { %v962_v48 = vadd.f32 %v960_v46, %v958_v45 }
 0xee1   :  { %v964_v50 = vrot.slane %v962_v48, 6 }
 0xee3   :  { %v966_v8 = vsel %vm278_vm2, %v956_v49, %v964_v50 }
 0xee4   :  { %1450 = vtanh.f32 %v966_v8  ;;  %v967_v9 = vmul.f32 0.5, %v966_v8 }
 0xee6   :  { %1452 = vtanh.f32 %v967_v9 }
 0xeee   :  { %v1451_v7 = vpop.eup %1450 }
 0xeef   :  { %979 = vrot.lane.b32.xlu0 %v1451_v7, %s1469_s8 }
 0xef0   :  { %v1453_v13 = vpop.eup %1452 }
 0xef1   :  { %v969_v51 = vmul.f32 0.5, %v1453_v13 }
 0xef3   :  { %v970_v52 = vadd.f32 0.5, %v969_v51 }
 0xef5   :  { %v977_v55 = vmul.f32 %v975_v3, %v970_v52 }
 0xf61   :  { %v980_v53 = vpop.permute.xlu0 %979 }
 0xf62   :  { %v982_v54 = vmul.f32 %v980_v53, %v970_v52 }
 0xf64   :  { %984 = vrot.lane.b32.xlu0 %v982_v54, %s1470_s9 }
 0xfd6   :  { %v985_v56 = vpop.permute.xlu0 %984 }
 0xfd7   :  { %v987_v57 = vadd.f32 %v985_v56, %v977_v55 }
 0xfd9   :  { %1454 = vtanh.f32 %v987_v57 }
 0xfe3   :  { %v1455_v58 = vpop.eup %1454 }
 0xfe4   :  { %990 = vrot.lane.b32.xlu1 %v1455_v58, %s1469_s8 }
 0xfe8   :  { %995 = vrot.lane.b32.xlu1 %v987_v57, %s1471_s10 }
0x1056   :  { %v991_v60 = vpop.permute.xlu1 %990 }
0x1057   :  { %v993_v61 = vmul.f32 %v991_v60, %v970_v52 }
0x1059   :  { %1000 = vrot.lane.b32.xlu0 %v993_v61, %s1470_s9 }
0x105a   :  { %v996_v62 = vpop.permute.xlu1 %995 }
0x105b   :  { %998 = vst.msk [vmem:[#allocation3] sm:$0xf] %vm180_vm0, %v996_v62 }
0x1062   :  { %v1109_v63 = vld [vmem:[#allocation3] sm:$0xf] }
0x1063   :  { %1111 = vrot.lane.b32.xlu1 %v1109_v63, %s1470_s9 }
0x10cb   :  { %v1001_v0 = vpop.permute.xlu0 %1000 }
0x10cc   :  { %1003 = vst.msk [vmem:[#allocation2] sm:$0xf] %vm180_vm0, %v1001_v0 }
0x10cd   :  { %1345 = vst.msk [vmem:[%s1768_s3 + $0xa] sm:$0x3] %vm318_vm3, %v1001_v0 }
0x10ce   :  { %1346 = vst.msk [vmem:[%s1769_s4 + $0x2] sm:$0xc] %vm321_vm4, %v1001_v0 }
0x10d3   :  { %v1008_v1 = vld [vmem:[#allocation2] sm:$0xf] }
0x10d4   :  { %1347 = vmatmul.mubr.msk.f32.vlgmr.msra.gmra.mrb[6].mxu0 %vm192_vm1, %v1008_v1 }
0x10d5   :  { %v1112_v24 = vpop.permute.xlu1 %1111 }
0x11a7   :  { %v1086_v4 = vpop.f32.mrb[6].mxu0 }
0x11a8   :  { %v1088_v5 = vpop.f32.mrb[7].mxu0  ;;  %v1093_v14 = vadd.f32 %v1092_v11, %v1086_v4 }
0x11a9   :  { %v1097_v10 = vrot.slane %v1088_v5, 2 }
0x11ab   :  { %v1099_v12 = vadd.f32 %v1097_v10, %v1095_v6 }
0x11ad   :  { %v1101_v15 = vrot.slane %v1099_v12, 6 }
0x11af   :  { %v1103_v16 = vsel %vm278_vm2, %v1093_v14, %v1101_v15 }
0x11b0   :  { %1456 = vtanh.f32 %v1103_v16  ;;  %v1104_v18 = vmul.f32 0.5, %v1103_v16 }
0x11b2   :  { %1458 = vtanh.f32 %v1104_v18 }
0x11ba   :  { %v1457_v17 = vpop.eup %1456 }
0x11bb   :  { %1116 = vrot.lane.b32.xlu0 %v1457_v17, %s1469_s8 }
0x11bc   :  { %v1459_v19 = vpop.eup %1458 }
0x11bd   :  { %v1106_v20 = vmul.f32 0.5, %v1459_v19 }
0x11bf   :  { %v1107_v21 = vadd.f32 0.5, %v1106_v20 }
0x11c1   :  { %v1114_v25 = vmul.f32 %v1112_v24, %v1107_v21 }
0x122d   :  { %v1117_v22 = vpop.permute.xlu0 %1116 }
0x122e   :  { %v1119_v23 = vmul.f32 %v1117_v22, %v1107_v21 }
0x1230   :  { %1121 = vrot.lane.b32.xlu0 %v1119_v23, %s1470_s9 }
0x12a2   :  { %v1122_v26 = vpop.permute.xlu0 %1121 }
0x12a3   :  { %v1124_v27 = vadd.f32 %v1122_v26, %v1114_v25 }
0x12a5   :  { %1460 = vtanh.f32 %v1124_v27 }
0x12af   :  { %v1461_v28 = vpop.eup %1460 }
0x12b0   :  { %1127 = vrot.lane.b32.xlu1 %v1461_v28, %s1469_s8 }
0x12b4   :  { %1132 = vrot.lane.b32.xlu1 %v1124_v27, %s1471_s10 }
0x1322   :  { %v1128_v30 = vpop.permute.xlu1 %1127 }
0x1323   :  { %v1130_v31 = vmul.f32 %v1128_v30, %v1107_v21 }
0x1325   :  { %1137 = vrot.lane.b32.xlu0 %v1130_v31, %s1470_s9 }
0x1326   :  { %v1133_v32 = vpop.permute.xlu1 %1132 }
0x1327   :  { %1135 = vst.msk [vmem:[#allocation3] sm:$0xf] %vm180_vm0, %v1133_v32 }
0x132e   :  { %v1245_v33 = vld [vmem:[#allocation3] sm:$0xf] }
0x132f   :  { %1247 = vrot.lane.b32.xlu1 %v1245_v33, %s1470_s9 }
0x1397   :  { %v1138_v34 = vpop.permute.xlu0 %1137 }
0x1398   :  { %1140 = vst.msk [vmem:[#allocation2] sm:$0xf] %vm180_vm0, %v1138_v34 }
0x1399   :  { %1348 = vst.msk [vmem:[%s1768_s3 + $0xc] sm:$0x3] %vm318_vm3, %v1138_v34 }
0x139a   :  { %1349 = vst.msk [vmem:[%s1769_s4] sm:$0xc] %vm321_vm4, %v1138_v34 }
0x139f   :  { %v1145_v35 = vld [vmem:[#allocation2] sm:$0xf] }
0x13a0   :  { %1350 = vmatmul.mubr.msk.f32.vlgmr.msra.gmra.mrb[6].mxu1 %vm192_vm1, %v1145_v35 }
0x13a1   :  { %v1248_v9 = vpop.permute.xlu1 %1247 }
0x1473   :  { %v1223_v37 = vpop.f32.mrb[6].mxu1 }
0x1474   :  { %v1225_v38 = vpop.f32.mrb[7].mxu1  ;;  %v1230_v43 = vadd.f32 %v1229_v41, %v1223_v37 }
0x1475   :  { %v1233_v40 = vrot.slane %v1225_v38, 2 }
0x1477   :  { %v1235_v42 = vadd.f32 %v1233_v40, %v1231_v39 }
0x1479   :  { %v1237_v44 = vrot.slane %v1235_v42, 6 }
0x147b   :  { %v1239_v45 = vsel %vm278_vm2, %v1230_v43, %v1237_v44 }
0x147c   :  { %1462 = vtanh.f32 %v1239_v45  ;;  %v1240_v47 = vmul.f32 0.5, %v1239_v45 }
0x147e   :  { %1464 = vtanh.f32 %v1240_v47 }
0x1486   :  { %v1463_v46 = vpop.eup %1462 }
0x1487   :  { %1252 = vrot.lane.b32.xlu0 %v1463_v46, %s1469_s8 }
0x1488   :  { %v1465_v48 = vpop.eup %1464 }
0x1489   :  { %v1242_v49 = vmul.f32 0.5, %v1465_v48 }
0x148b   :  { %v1243_v50 = vadd.f32 0.5, %v1242_v49 }
0x148d   :  { %v1250_v13 = vmul.f32 %v1248_v9, %v1243_v50 }
0x14f9   :  { %v1253_v8 = vpop.permute.xlu0 %1252 }
0x14fa   :  { %v1255_v7 = vmul.f32 %v1253_v8, %v1243_v50 }
0x14fc   :  { %1257 = vrot.lane.b32.xlu0 %v1255_v7, %s1470_s9 }
0x156e   :  { %v1258_v51 = vpop.permute.xlu0 %1257 }
0x156f   :  { %v1260_v52 = vadd.f32 %v1258_v51, %v1250_v13 }
0x1571   :  { %1466 = vtanh.f32 %v1260_v52  ;;  %1268 = vrot.lane.b32.xlu0 %v1260_v52, %s1471_s10 }
0x157b   :  { %v1467_v53 = vpop.eup %1466 }
0x157c   :  { %1263 = vrot.lane.b32.xlu1 %v1467_v53, %s1469_s8 }
0x15e3   :  { %v1269_v54 = vpop.permute.xlu0 %1268 }
0x15e4   :  { %1271 = vst.msk [vmem:[#allocation3] sm:$0xf] %vm180_vm0, %v1269_v54 }
0x15ee   :  { %v1264_v3 = vpop.permute.xlu1 %1263 }
0x15ef   :  { %v1266_v55 = vmul.f32 %v1264_v3, %v1243_v50 }
0x15f1   :  { %1273 = vrot.lane.b32.xlu1 %v1266_v55, %s1470_s9 }
0x1663   :  { %v1274_v56 = vpop.permute.xlu1 %1273 }
0x1664   :  { %1276 = vst.msk [vmem:[#allocation2] sm:$0xf] %vm180_vm0, %v1274_v56 }
0x1665   :  { %1351 = vst.msk [vmem:[%s1768_s3 + $0xe] sm:$0x3] %vm318_vm3, %v1274_v56 }
0x1666   :  { %1279 = vst.msk [vmem:[%s1769_s4 - $0x2] sm:$0xc] %vm321_vm4, %v1274_v56 }

</bundles_post_ra>
